<compile_context>
chip_gen: v6e
topology: v6e:2x2x1
jax: 0.10.0
libtpu: 0.0.40
codegen_flags: <defaults>
</compile_context>

<pallas_src>
import jax
import jax.numpy as jnp
from jax.experimental import pallas as pl
from jax.experimental.pallas import tpu as pltpu

SPARSITY_THRESHOLD = 0.01
NUM_BLOCKS = 8
MAX_TILE_N = 16384  # lanes per grid step (multiple of 128)


def _fourier_kernel(x_ref, w1_ref, b1_ref, w2_ref, b2_ref, o_ref):
    """One N-tile of the spectral filter.

    Shapes seen by the kernel:
      x   : (2C, n_tile)     rfft2(x) with real stacked over imag (channel-major)
      w1  : (2*Ch, 2*C)      block-diagonal complex-as-real layer-1 weight
      b1  : (2*Ch, 1)
      w2  : (2*C, 2*Ch)      block-diagonal complex-as-real layer-2 weight
      b2  : (2*C, 1)
      o   : (2C, n_tile)     filtered spectrum, real stacked over imag
    """
    x = x_ref[...]                                       # (2C, n_tile), no copy needed

    f32 = jnp.float32
    # layer 1 (complex linear as one real matmul) + ReLU
    h = jnp.maximum(
        jnp.dot(w1_ref[...], x, preferred_element_type=f32) + b1_ref[...], 0.0)
    # layer 2
    o = jnp.dot(w2_ref[...], h, preferred_element_type=f32) + b2_ref[...]

    # softshrink(o, lam) == o - clip(o, -lam, lam)
    lam = SPARSITY_THRESHOLD
    s = o - jnp.clip(o, -lam, lam)

    c = x.shape[0] // 2
    xr, xi = x[:c], x[c:]
    sr, si = s[:c], s[c:]

    # complex multiply with the original spectrum (aligned sublane-slice stores)
    o_ref[:c, :] = sr * xr - si * xi
    o_ref[c:, :] = sr * xi + si * xr


def _block_diag_T(w):
    """w: (nb, d_in, d_out). Block-diagonal (nb*d_out, nb*d_in) with blocks w[k].T."""
    nb, di, do = w.shape
    eye = jnp.eye(nb, dtype=w.dtype)
    wt = jnp.swapaxes(w, 1, 2)  # (nb, d_out, d_in)
    return jnp.einsum("koi,kl->koli", wt, eye).reshape(nb * do, nb * di)


def _pack_complex_weights(w, b):
    """w: (2, nb, d_in, d_out), b: (2, nb, d_out) ->
       W_full: (2*nb*d_out, 2*nb*d_in) = [[Wr, -Wi], [Wi, Wr]],  b_full: (2*nb*d_out, 1)."""
    wr = _block_diag_T(w[0])
    wi = _block_diag_T(w[1])
    top = jnp.concatenate([wr, -wi], axis=1)
    bot = jnp.concatenate([wi, wr], axis=1)
    w_full = jnp.concatenate([top, bot], axis=0)
    b_full = jnp.concatenate([b[0].reshape(-1), b[1].reshape(-1)])[:, None]
    return w_full, b_full


def _round_up(v, m):
    return ((v + m - 1) // m) * m


def _choose_tile_n(n, max_tile=MAX_TILE_N):
    """Lane-tile size: multiple of 128, capped, and >= 2 grid steps when possible
    so the 'parallel' N axis can be sharded across both TensorCores on v7x."""
    n128 = _round_up(max(n, 1), 128)
    half = max(128, _round_up((n128 + 1) // 2, 128))
    return min(max_tile, half, n128)


def _spectral_filter(x_ri, w1, b1, w2, b2):
    """x_ri: (2C, N) float32, real stacked over imag. Returns filtered (2C, N)."""
    two_c_in, N = x_ri.shape
    C = two_c_in // 2
    assert C % 8 == 0, "hidden_size must be a multiple of 8 for sublane-aligned tiling"

    w1_full, b1_full = _pack_complex_weights(w1, b1)   # (2*Ch, 2*C), (2*Ch, 1)
    w2_full, b2_full = _pack_complex_weights(w2, b2)   # (2*C, 2*Ch), (2*C, 1)
    two_ch = w1_full.shape[0]
    two_c = w2_full.shape[0]
    assert two_c == two_c_in

    tile_n = _choose_tile_n(N)
    n_total = _round_up(N, tile_n)
    if n_total != N:
        x_ri = jnp.pad(x_ri, ((0, 0), (0, n_total - N)))

    grid = (n_total // tile_n,)

    # VMEM budget: double-buffered in + out tiles, resident weights, headroom for
    # in-kernel intermediates.  Clamp to 48 MiB (safe on v7x's 64 MiB physical,
    # well above v5e's 16 MiB default scoped limit).
    tile_bytes = two_c * tile_n * 4
    weight_bytes = 4 * (w1_full.size + b1_full.size + w2_full.size + b2_full.size)
    vmem_limit_bytes = int(min(48 * 1024 * 1024,
                               max(16 * 1024 * 1024,
                                   10 * tile_bytes + weight_bytes + (1 << 20))))

    cost = pl.CostEstimate(
        flops=4 * two_ch * two_c * n_total,             # two complex-as-real matmuls
        transcendentals=0,
        bytes_accessed=4 * (2 * two_c * n_total         # stacked input + stacked output
                            + 2 * two_ch * two_c + two_ch + two_c))

    data_spec = pl.BlockSpec((two_c, tile_n), lambda t: (0, t))
    resident = lambda arr: pl.BlockSpec(arr.shape, lambda t: (0, 0))

    out = pl.pallas_call(
        _fourier_kernel,
        out_shape=jax.ShapeDtypeStruct((two_c, n_total), jnp.float32),
        grid=grid,
        in_specs=[
            data_spec,                 # stacked spectrum
            resident(w1_full),         # w1 (stays resident across N tiles)
            resident(b1_full),         # b1
            resident(w2_full),         # w2
            resident(b2_full),         # b2
        ],
        out_specs=data_spec,
        compiler_params=pltpu.CompilerParams(
            dimension_semantics=("parallel",),
            vmem_limit_bytes=vmem_limit_bytes),
        cost_estimate=cost,
    )(x_ri, w1_full, b1_full, w2_full, b2_full)

    if n_total != N:
        out = out[:, :N]
    return out


def fourier_forward(x, params, num_blocks=NUM_BLOCKS):
    """JAX/Pallas equivalent of Fourier.forward. x: (a, C, T, H, W)."""
    w1, b1, w2, b2 = params["w1"], params["b1"], params["w2"], params["b2"]
    a, C, T, H, W = x.shape
    if C % num_blocks != 0:
        raise ValueError("hidden_size must be divisible by num_blocks")
    if W % 2 != 0:
        raise ValueError("W must be even for irfft2 with s=(H, W)")

    in_dtype = x.dtype
    B = a * T

    # (a, C, T, H, W) -> (C, a*T, H, W): one transpose of the REAL input so the
    # spectrum is already channel-major (no spectrum-sized transposes needed).
    xc = jnp.transpose(x, (1, 0, 2, 3, 4)).reshape(C, B, H, W)
    bias = xc

    spec = jnp.fft.rfft2(xc.astype(jnp.float32), axes=(2, 3), norm="ortho")  # (C, B, H, Wf)
    Wf = spec.shape[-1]
    N = B * H * Wf

    # Single fused stacking of real over imag -> (2C, N); feeds the kernel directly.
    x_ri = jnp.concatenate([jnp.real(spec), jnp.imag(spec)], axis=0).reshape(2 * C, N)

    out = _spectral_filter(x_ri, w1, b1, w2, b2)        # (2C, N)

    out_c = jax.lax.complex(out[:C], out[C:]).reshape(C, B, H, Wf)
    y = jnp.fft.irfft2(out_c, s=(H, W), axes=(2, 3), norm="ortho").astype(in_dtype)

    fm = y + bias                                       # (C, B, H, W)
    fm = fm.reshape(C, a, T, H, W)
    return jnp.transpose(fm, (1, 0, 2, 3, 4))           # (a, C, T, H, W)


def fourier_forward_ref(x, params, num_blocks=NUM_BLOCKS):
    """Pure-JAX reference mirroring the PyTorch forward (einsum form)."""
    w1, b1, w2, b2 = params["w1"], params["b1"], params["w2"], params["b2"]
    a, C, T, H, W = x.shape
    xt = jnp.swapaxes(x, 1, 2).reshape(a * T, C, H, W)
    bias = xt
    in_dtype = xt.dtype
    spec = jnp.fft.rfft2(xt.astype(jnp.float32), axes=(2, 3), norm="ortho")
    origin = spec
    bs = C // num_blocks
    Wf = spec.shape[-1]
    xr = jnp.real(spec).reshape(a * T, num_blocks, bs, H, Wf)
    xi = jnp.imag(spec).reshape(a * T, num_blocks, bs, H, Wf)
    ein = lambda d, w: jnp.einsum("bkihw,kio->bkohw", d, w)
    o1r = jax.nn.relu(ein(xr, w1[0]) - ein(xi, w1[1]) + b1[0][:, :, None, None])
    o1i = jax.nn.relu(ein(xi, w1[0]) + ein(xr, w1[1]) + b1[1][:, :, None, None])
    o2r = ein(o1r, w2[0]) - ein(o1i, w2[1]) + b2[0][:, :, None, None]
    o2i = ein(o1i, w2[0]) + ein(o1r, w2[1]) + b2[1][:, :, None, None]
    lam = SPARSITY_THRESHOLD
    ss = lambda v: jnp.where(v > lam, v - lam, jnp.where(v < -lam, v + lam, 0.0))
    xcplx = jax.lax.complex(ss(o2r), ss(o2i)).reshape(a * T, C, H, Wf) * origin
    y = jnp.fft.irfft2(xcplx, s=(H, W), axes=(2, 3), norm="ortho").astype(in_dtype)
    fm = (y + bias).reshape(a, T, C, H, W)
    return jnp.swapaxes(fm, 1, 2)


if __name__ == "__main__":
    key = jax.random.PRNGKey(0)
    hidden_size = 32                       # -> block_size = 4
    a, T, H, W = 2, 4, 16, 16
    bs = hidden_size // NUM_BLOCKS
    scale = 0.02

    k1, k2, k3, k4, k5 = jax.random.split(key, 5)
    params = dict(
        w1=scale * jax.random.normal(k1, (2, NUM_BLOCKS, bs, bs), jnp.float32),
        b1=scale * jax.random.normal(k2, (2, NUM_BLOCKS, bs), jnp.float32),
        w2=scale * jax.random.normal(k3, (2, NUM_BLOCKS, bs, bs), jnp.float32),
        b2=scale * jax.random.normal(k4, (2, NUM_BLOCKS, bs), jnp.float32),
    )
    x = jax.random.normal(k5, (a, hidden_size, T, H, W), jnp.float32)

    out = jax.jit(fourier_forward)(x, params)
    out = jax.block_until_ready(out)
    assert out.shape == x.shape and out.dtype == x.dtype

    ref = fourier_forward_ref(x, params)
    max_err = float(jnp.max(jnp.abs(out - ref)))
    if max_err > 1e-3:
        raise AssertionError(f"mismatch vs reference: max abs err = {max_err}")

    print("KERNEL_OK")
</pallas_src>

<mosaic_0001>
module attributes {stable_mosaic.version = 11 : i64} {
  func.func @_fourier_kernel(%arg0: i32, %arg1: memref<64x640xf32, #tpu.memory_space<vmem>>, %arg2: memref<64x64xf32, #tpu.memory_space<vmem>>, %arg3: memref<64x1xf32, #tpu.memory_space<vmem>>, %arg4: memref<64x64xf32, #tpu.memory_space<vmem>>, %arg5: memref<64x1xf32, #tpu.memory_space<vmem>>, %arg6: memref<64x640xf32, #tpu.memory_space<vmem>>) attributes {dimension_semantics = [#tpu.dimension_semantics<parallel>], iteration_bounds = array<i64: 2>, scalar_prefetch = 0 : i64, scratch_operands = 0 : i64, tpu.core_type = #tpu.core_type<tc>, window_params = [{transform_indices = @transform_0, window_bounds = array<i64: 64, 640>}, {pipeline_mode = #tpu.pipeline_mode<synchronous>, transform_indices = @transform_1, window_bounds = array<i64: 64, 64>}, {pipeline_mode = #tpu.pipeline_mode<synchronous>, transform_indices = @transform_2, window_bounds = array<i64: 64, 1>}, {pipeline_mode = #tpu.pipeline_mode<synchronous>, transform_indices = @transform_3, window_bounds = array<i64: 64, 64>}, {pipeline_mode = #tpu.pipeline_mode<synchronous>, transform_indices = @transform_4, window_bounds = array<i64: 64, 1>}, {transform_indices = @transform_5, window_bounds = array<i64: 64, 640>}]} {
    %c0 = arith.constant 0 : index
    %c0_0 = arith.constant 0 : index
    %0 = vector.load %arg1[%c0, %c0_0] : memref<64x640xf32, #tpu.memory_space<vmem>>, vector<64x640xf32>
    %c0_1 = arith.constant 0 : index
    %c0_2 = arith.constant 0 : index
    %1 = vector.load %arg2[%c0_1, %c0_2] : memref<64x64xf32, #tpu.memory_space<vmem>>, vector<64x64xf32>
    %cst = arith.constant dense<0.000000e+00> : vector<64x640xf32>
    %2 = tpu.matmul %1, %0, %cst {dimension_numbers = #tpu.dot_dimension_numbers<[1], [0], [0], [1], [0, 0, 1, 1], [], []>} : vector<64x64xf32>, vector<64x640xf32>, vector<64x640xf32> -> vector<64x640xf32>
    %c0_3 = arith.constant 0 : index
    %c0_4 = arith.constant 0 : index
    %3 = vector.load %arg3[%c0_3, %c0_4] : memref<64x1xf32, #tpu.memory_space<vmem>>, vector<64x1xf32>
    %4 = vector.broadcast %3 : vector<64x1xf32> to vector<64x640xf32>
    %5 = arith.addf %2, %4 : vector<64x640xf32>
    %cst_5 = arith.constant 0.000000e+00 : f32
    %6 = vector.broadcast %cst_5 : f32 to vector<64x640xf32>
    %7 = arith.maximumf %5, %6 : vector<64x640xf32>
    %c0_6 = arith.constant 0 : index
    %c0_7 = arith.constant 0 : index
    %8 = vector.load %arg4[%c0_6, %c0_7] : memref<64x64xf32, #tpu.memory_space<vmem>>, vector<64x64xf32>
    %cst_8 = arith.constant dense<0.000000e+00> : vector<64x640xf32>
    %9 = tpu.matmul %8, %7, %cst_8 {dimension_numbers = #tpu.dot_dimension_numbers<[1], [0], [0], [1], [0, 0, 1, 1], [], []>} : vector<64x64xf32>, vector<64x640xf32>, vector<64x640xf32> -> vector<64x640xf32>
    %c0_9 = arith.constant 0 : index
    %c0_10 = arith.constant 0 : index
    %10 = vector.load %arg5[%c0_9, %c0_10] : memref<64x1xf32, #tpu.memory_space<vmem>>, vector<64x1xf32>
    %11 = vector.broadcast %10 : vector<64x1xf32> to vector<64x640xf32>
    %12 = arith.addf %9, %11 : vector<64x640xf32>
    %cst_11 = arith.constant -0.00999999977 : f32
    %cst_12 = arith.constant 0.00999999977 : f32
    %13 = vector.broadcast %cst_11 : f32 to vector<64x640xf32>
    %14 = arith.maximumf %13, %12 : vector<64x640xf32>
    %15 = vector.broadcast %cst_12 : f32 to vector<64x640xf32>
    %16 = arith.minimumf %15, %14 : vector<64x640xf32>
    %17 = arith.subf %12, %16 : vector<64x640xf32>
    %18 = vector.extract_strided_slice %0 {offsets = [0, 0], sizes = [32, 640], strides = [1, 1]} : vector<64x640xf32> to vector<32x640xf32>
    %19 = vector.extract_strided_slice %0 {offsets = [32, 0], sizes = [32, 640], strides = [1, 1]} : vector<64x640xf32> to vector<32x640xf32>
    %20 = vector.extract_strided_slice %17 {offsets = [0, 0], sizes = [32, 640], strides = [1, 1]} : vector<64x640xf32> to vector<32x640xf32>
    %21 = vector.extract_strided_slice %17 {offsets = [32, 0], sizes = [32, 640], strides = [1, 1]} : vector<64x640xf32> to vector<32x640xf32>
    %22 = arith.mulf %20, %18 : vector<32x640xf32>
    %23 = arith.mulf %21, %19 : vector<32x640xf32>
    %24 = arith.subf %22, %23 : vector<32x640xf32>
    %c0_13 = arith.constant 0 : index
    %c0_14 = arith.constant 0 : index
    %25 = vector.load %arg6[%c0_13, %c0_14] : memref<64x640xf32, #tpu.memory_space<vmem>>, vector<32x640xf32>
    tpu.vector_store %arg6[%c0_13, %c0_14], %24 {strides = array<i32>} : memref<64x640xf32, #tpu.memory_space<vmem>>, vector<32x640xf32>,
    %26 = arith.mulf %20, %19 : vector<32x640xf32>
    %27 = arith.mulf %21, %18 : vector<32x640xf32>
    %28 = arith.addf %26, %27 : vector<32x640xf32>
    %c32 = arith.constant 32 : index
    %c0_15 = arith.constant 0 : index
    %29 = vector.load %arg6[%c32, %c0_15] : memref<64x640xf32, #tpu.memory_space<vmem>>, vector<32x640xf32>
    tpu.vector_store %arg6[%c32, %c0_15], %28 {strides = array<i32>} : memref<64x640xf32, #tpu.memory_space<vmem>>, vector<32x640xf32>,
    return
  }
  func.func @transform_0(%arg0: i32) -> (i32, i32) {
    %c0_i32 = arith.constant 0 : i32
    %c0_i32_0 = arith.constant 0 : i32
    return %c0_i32, %arg0 : i32, i32
  }
  func.func @transform_1(%arg0: i32) -> (i32, i32) {
    %c0_i32 = arith.constant 0 : i32
    %c0_i32_0 = arith.constant 0 : i32
    %c0_i32_1 = arith.constant 0 : i32
    return %c0_i32, %c0_i32_0 : i32, i32
  }
  func.func @transform_2(%arg0: i32) -> (i32, i32) {
    %c0_i32 = arith.constant 0 : i32
    %c0_i32_0 = arith.constant 0 : i32
    %c0_i32_1 = arith.constant 0 : i32
    return %c0_i32, %c0_i32_0 : i32, i32
  }
  func.func @transform_3(%arg0: i32) -> (i32, i32) {
    %c0_i32 = arith.constant 0 : i32
    %c0_i32_0 = arith.constant 0 : i32
    %c0_i32_1 = arith.constant 0 : i32
    return %c0_i32, %c0_i32_0 : i32, i32
  }
  func.func @transform_4(%arg0: i32) -> (i32, i32) {
    %c0_i32 = arith.constant 0 : i32
    %c0_i32_0 = arith.constant 0 : i32
    %c0_i32_1 = arith.constant 0 : i32
    return %c0_i32, %c0_i32_0 : i32, i32
  }
  func.func @transform_5(%arg0: i32) -> (i32, i32) {
    %c0_i32 = arith.constant 0 : i32
    %c0_i32_0 = arith.constant 0 : i32
    return %c0_i32, %arg0 : i32, i32
  }
}

</mosaic_0001>

<bundles_post_ra>
// kernel: neg.2
= control target key start
LH: loop header
LB: loop body
LE: loop exit
PB: predicated region body
PF: predicated region fallthrough
CT: control target
= control target key end

     0   :  { %s72_s0 = inlined_call_operand.vmem [shape: f32[32,32], index: 0, kind: input, shape index: {}]   ;;  %s73_s1 = inlined_call_operand.vmem [shape: f32[32,32], index: 1, kind: output, shape index: {}]  }
   0x1   :  { %v2_v0 = vld [vmem:[%s72_s0] sm:$0xff]  ;;  %v32_v1 = vld [vmem:[%s72_s0 + $0x8] sm:$0xff]  ;;  %v34_v2 = vld [vmem:[%s72_s0 + $0x10] sm:$0xff] }
   0x2   :  { %v5_v3 = vxor.u32 2147483648, %v2_v0  ;;  %v12_v4 = vxor.u32 2147483648, %v32_v1  ;;  %v20_v5 = vxor.u32 2147483648, %v34_v2  ;;  %v36_v6 = vld [vmem:[%s72_s0 + $0x18] sm:$0xff] }
   0x3   :  { %v28_v7 = vxor.u32 2147483648, %v36_v6 }
   0x4   :  { %7 = vst [vmem:[%s73_s1] sm:$0xff] %v5_v3  ;;  %33 = vst [vmem:[%s73_s1 + $0x8] sm:$0xff] %v12_v4 }
   0x5   :  { %35 = vst [vmem:[%s73_s1 + $0x10] sm:$0xff] %v20_v5  ;;  %37 = vst [vmem:[%s73_s1 + $0x18] sm:$0xff] %v28_v7 }

// kernel: squeeze.10
= control target key start
LH: loop header
LB: loop body
LE: loop exit
PB: predicated region body
PF: predicated region fallthrough
CT: control target
= control target key end

     0   :  { %s69_s10 = smov 28   ;;  %s70_s11 = smov 20   ;;  %vm3_vm0 = vcmask 31744   ;;  %vm9_vm1 = vcmask 261344   ;;  %vm15_vm2 = vcmask 228544   ;;  %vm21_vm3 = vcmask 195744   ;;  %s113_s0 = inlined_call_operand.vmem [shape: f32[1,8,4], index: 0, kind: input, shape index: {}]   ;;  %s114_s1 = inlined_call_operand.vmem [shape: f32[32], index: 1, kind: output, shape index: {}]  }
   0x1   :  { %v55_v0 = vld [vmem:[%s113_s0 + $0x7] sm:$0x1]   ;;  %v57_v1 = vld [vmem:[%s113_s0 + $0x5] sm:$0x1]   ;;  %v56_v2 = vld [vmem:[%s113_s0 + $0x6] sm:$0x1]  }
   0x2   :  { %7 = vrot.lane.b32.xlu0 %v55_v0, %s69_s10  ;;  %19 = vrot.lane.b32.xlu1 %v57_v1, %s70_s11  ;;  %v58_v3 = vld [vmem:[%s113_s0 + $0x4] sm:$0x1]   ;;  %v2_v4 = vld [vmem:[%s113_s0] sm:$0x1]   ;;  %s71_s18 = smov 24   ;;  %s72_s19 = smov 16  }
   0x3   :  { %4 = vst.msk [vmem:[#allocation0] sm:$0x1] %vm3_vm0, %v2_v4   ;;  %v59_v5 = vld [vmem:[%s113_s0 + $0x3] sm:$0x1]   ;;  %v60_v6 = vld [vmem:[%s113_s0 + $0x2] sm:$0x1]  }
   0x4   :  { %s73_s24 = smov 12   ;;  %s74_s25 = smov 8   ;;  %v61_v7 = vld [vmem:[%s113_s0 + $0x1] sm:$0x1]   ;;  %vm27_vm4 = vcmask 162944   ;;  %vm33_vm5 = vcmask 130144  }
   0x5   :  { %s75_s0 = smov 4   ;;  %vm39_vm6 = vcmask 97344   ;;  %vm45_vm7 = vcmask 64544  }
   0x6   :  { %13 = vrot.lane.b32.xlu0 %v56_v2, %s71_s18  ;;  %25 = vrot.lane.b32.xlu1 %v58_v3, %s72_s19 }
   0xa   :  { %31 = vrot.lane.b32.xlu0 %v59_v5, %s73_s24  ;;  %37 = vrot.lane.b32.xlu1 %v60_v6, %s74_s25 }
   0xe   :  { %43 = vrot.lane.b32.xlu0 %v61_v7, %s75_s0 }
  0x74   :  { %v8_v8 = vpop.permute.xlu0 %7   ;;  %v20_v9 = vpop.permute.xlu1 %19  }
  0x75   :  { %10 = vst.msk [vmem:[#allocation0] sm:$0x1] %vm9_vm1, %v8_v8  }
  0x78   :  { %v14_v10 = vpop.permute.xlu0 %13   ;;  %v26_v11 = vpop.permute.xlu1 %25  }
  0x79   :  { %16 = vst.msk [vmem:[#allocation0] sm:$0x1] %vm15_vm2, %v14_v10  }
  0x7a   :  { %22 = vst.msk [vmem:[#allocation0] sm:$0x1] %vm21_vm3, %v20_v9  }
  0x7b   :  { %28 = vst.msk [vmem:[#allocation0] sm:$0x1] %vm27_vm4, %v26_v11  }
  0x7c   :  { %v32_v12 = vpop.permute.xlu0 %31   ;;  %v38_v13 = vpop.permute.xlu1 %37  }
  0x7d   :  { %34 = vst.msk [vmem:[#allocation0] sm:$0x1] %vm33_vm5, %v32_v12  }
  0x7e   :  { %40 = vst.msk [vmem:[#allocation0] sm:$0x1] %vm39_vm6, %v38_v13  }
  0x80   :  { %v44_v14 = vpop.permute.xlu0 %43  }
  0x81   :  { %46 = vst.msk [vmem:[#allocation0] sm:$0x1] %vm45_vm7, %v44_v14  }
  0x88   :  { %v51_v15 = vld [vmem:[#allocation0] sm:$0x1] }
  0x89   :  { %54 = vst [vmem:[%s114_s1] sm:$0x1] %v51_v15 }

// kernel: fourier_forward.1
= control target key start
LH: loop header
LB: loop body
LE: loop exit
PB: predicated region body
PF: predicated region fallthrough
CT: control target
= control target key end

     0   :  { %s1966_s18 = smov 0   ;;  %s1968_s19 = smov 0   ;;  %s2924_s0 = inlined_call_operand.vmem [shape: f32[64,1280], index: 0, kind: input, shape index: {}]   ;;  %s2925_s1 = inlined_call_operand.vmem [shape: f32[64,64], index: 1, kind: input, shape index: {}]   ;;  %s2926_s2 = inlined_call_operand.vmem [shape: f32[64,1], index: 2, kind: input, shape index: {}]   ;;  %s2927_s3 = inlined_call_operand.vmem [shape: f32[64,64], index: 3, kind: input, shape index: {}]   ;;  %s2928_s4 = inlined_call_operand.vmem [shape: f32[64,1], index: 4, kind: input, shape index: {}]   ;;  %s2929_s5 = inlined_call_operand.vmem [shape: f32[64,1280], index: 5, kind: output, shape index: {}]  }
   0x1   :  { %s1970_s20 = smov 0  }
   0x2 LB: > { %s1663_s21 = sadd.s32 4294967295, %s1932_s20   ;;  %s1983_s22 = sadd.s32 1, %s1932_s20   ;;  %s1932_s20 = sphi %s1970_s20, %s3011_s20   ;;  %s1928_s19 = sphi %s1968_s19, %s3010_s19   ;;  %s1924_s18 = sphi %s1966_s18, %s3009_s18  }
   0x3   : > { %s19_s23 = ssub.s32 %s1932_s20, %s1983_s22  ;;  %s22_s24 = sadd.s32 1, %s1928_s19 }
   0x4   : > { %p20_p0 = scmp.eq.s32.totalorder %s19_s23, 0  ;;  %p29_p1 = scmp.ne.s32.totalorder %s1928_s19, %s1924_s18 }
   0x5   : > { %p30_p2 = scmp.eq.s32.totalorder %s1932_s20, 0  ;;  %p143_p3 = scmp.eq.s32.totalorder %s1663_s21, 1 }
   0x6   : > { %s1994_s25 = scalar_select %p20_p0, %s1928_s19, %s22_s24  }
   0x7   : > { %p31_p4 = por %p30_p2, %p29_p1  ;;  %p1996_p5 = por %p143_p3, %p29_p1 }
   0x8   : > { %p1666_p6 = scmp.ge.s32.totalorder %s1932_s20, 2 }
   0xa   : > { %177 = sbr.rel (%p1666_p6) target bundleno = 40 (0x28), region = 32 }
   0xf   : > { %180 = sbr.rel (!%p31_p4) target bundleno = 40 (0x28), region = 36  ;;  %s182_s27 = sand.u32 (%p31_p4), 1, %s1928_s19  }
  0x10   : > { %s1760_s28 = smul.u32 (%p31_p4), 40, %s1932_s20 }
  0x11   : > { %s1850_s29 = smul.u32 (%p31_p4), 320, %s182_s27 }
  0x12   : > { %s2006_s7 = scalar_lea.vmem (%p31_p4), %s2924_s0, %s1760_s28 }
  0x13   : > { %v200_v0 = vld [vmem:[%s2006_s7] sm:$0xff] (%p31_p4)  ;;  %v202_v1 = vld [vmem:[%s2006_s7 + $0x8] sm:$0xff] (%p31_p4)  ;;  %v204_v2 = vld [vmem:[%s2006_s7 + $0x10] sm:$0xff] (%p31_p4)  ;;  %s2011_s8 = scalar_lea.vmem (%p31_p4), [#allocation2], %s1850_s29 }
  0x14   : > { %201 = vst [vmem:[%s2011_s8] sm:$0xff] %v200_v0  ;;  %203 = vst [vmem:[%s2011_s8 + $0x8] sm:$0xff] %v202_v1  ;;  %v206_v3 = vld [vmem:[%s2006_s7 + $0x18] sm:$0xff]  ;;  %v208_v4 = vld [vmem:[%s2006_s7 + $0x20] sm:$0xff] }
  0x15   : > { %205 = vst [vmem:[%s2011_s8 + $0x10] sm:$0xff] %v204_v2  ;;  %v210_v5 = vld [vmem:[%s2006_s7 + $0x50] sm:$0xff]  ;;  %207 = vst [vmem:[%s2011_s8 + $0x18] sm:$0xff] %v206_v3  ;;  %v212_v6 = vld [vmem:[%s2006_s7 + $0x58] sm:$0xff] }
  0x16   : > { %209 = vst [vmem:[%s2011_s8 + $0x20] sm:$0xff] %v208_v4  ;;  %211 = vst [vmem:[%s2011_s8 + $0x28] sm:$0xff] %v210_v5  ;;  %v214_v7 = vld [vmem:[%s2006_s7 + $0x60] sm:$0xff]  ;;  %v216_v8 = vld [vmem:[%s2006_s7 + $0x68] sm:$0xff] }
  0x17   : > { %213 = vst [vmem:[%s2011_s8 + $0x30] sm:$0xff] %v212_v6  ;;  %215 = vst [vmem:[%s2011_s8 + $0x38] sm:$0xff] %v214_v7  ;;  %v218_v9 = vld [vmem:[%s2006_s7 + $0x70] sm:$0xff]  ;;  %v220_v10 = vld [vmem:[%s2006_s7 + $0xa0] sm:$0xff] }
  0x18   : > { %217 = vst [vmem:[%s2011_s8 + $0x40] sm:$0xff] %v216_v8  ;;  %v222_v11 = vld [vmem:[%s2006_s7 + $0xa8] sm:$0xff]  ;;  %219 = vst [vmem:[%s2011_s8 + $0x48] sm:$0xff] %v218_v9  ;;  %v224_v12 = vld [vmem:[%s2006_s7 + $0xb0] sm:$0xff] }
  0x19   : > { %221 = vst [vmem:[%s2011_s8 + $0x50] sm:$0xff] %v220_v10  ;;  %223 = vst [vmem:[%s2011_s8 + $0x58] sm:$0xff] %v222_v11  ;;  %v226_v13 = vld [vmem:[%s2006_s7 + $0xb8] sm:$0xff]  ;;  %v228_v14 = vld [vmem:[%s2006_s7 + $0xc0] sm:$0xff] }
  0x1a   : > { %225 = vst [vmem:[%s2011_s8 + $0x60] sm:$0xff] %v224_v12  ;;  %227 = vst [vmem:[%s2011_s8 + $0x68] sm:$0xff] %v226_v13  ;;  %v230_v15 = vld [vmem:[%s2006_s7 + $0xf0] sm:$0xff]  ;;  %v232_v16 = vld [vmem:[%s2006_s7 + $0xf8] sm:$0xff] }
  0x1b   : > { %229 = vst [vmem:[%s2011_s8 + $0x70] sm:$0xff] %v228_v14  ;;  %v234_v17 = vld [vmem:[%s2006_s7 + $0x100] sm:$0xff]  ;;  %231 = vst [vmem:[%s2011_s8 + $0x78] sm:$0xff] %v230_v15  ;;  %v236_v18 = vld [vmem:[%s2006_s7 + $0x108] sm:$0xff] }
  0x1c   : > { %233 = vst [vmem:[%s2011_s8 + $0x80] sm:$0xff] %v232_v16  ;;  %235 = vst [vmem:[%s2011_s8 + $0x88] sm:$0xff] %v234_v17  ;;  %v238_v19 = vld [vmem:[%s2006_s7 + $0x110] sm:$0xff]  ;;  %v240_v20 = vld [vmem:[%s2006_s7 + $0x140] sm:$0xff] }
  0x1d   : > { %237 = vst [vmem:[%s2011_s8 + $0x90] sm:$0xff] %v236_v18  ;;  %239 = vst [vmem:[%s2011_s8 + $0x98] sm:$0xff] %v238_v19  ;;  %v242_v21 = vld [vmem:[%s2006_s7 + $0x148] sm:$0xff]  ;;  %v244_v22 = vld [vmem:[%s2006_s7 + $0x150] sm:$0xff] }
  0x1e   : > { %241 = vst [vmem:[%s2011_s8 + $0xa0] sm:$0xff] %v240_v20  ;;  %v246_v23 = vld [vmem:[%s2006_s7 + $0x158] sm:$0xff]  ;;  %243 = vst [vmem:[%s2011_s8 + $0xa8] sm:$0xff] %v242_v21  ;;  %v248_v24 = vld [vmem:[%s2006_s7 + $0x160] sm:$0xff] }
  0x1f   : > { %245 = vst [vmem:[%s2011_s8 + $0xb0] sm:$0xff] %v244_v22  ;;  %247 = vst [vmem:[%s2011_s8 + $0xb8] sm:$0xff] %v246_v23  ;;  %v250_v25 = vld [vmem:[%s2006_s7 + $0x190] sm:$0xff]  ;;  %v252_v26 = vld [vmem:[%s2006_s7 + $0x198] sm:$0xff] }
  0x20   : > { %249 = vst [vmem:[%s2011_s8 + $0xc0] sm:$0xff] %v248_v24  ;;  %251 = vst [vmem:[%s2011_s8 + $0xc8] sm:$0xff] %v250_v25  ;;  %v254_v27 = vld [vmem:[%s2006_s7 + $0x1a0] sm:$0xff]  ;;  %v256_v28 = vld [vmem:[%s2006_s7 + $0x1a8] sm:$0xff] }
  0x21   : > { %253 = vst [vmem:[%s2011_s8 + $0xd0] sm:$0xff] %v252_v26  ;;  %v258_v29 = vld [vmem:[%s2006_s7 + $0x1b0] sm:$0xff]  ;;  %255 = vst [vmem:[%s2011_s8 + $0xd8] sm:$0xff] %v254_v27  ;;  %v260_v30 = vld [vmem:[%s2006_s7 + $0x1e0] sm:$0xff] }
  0x22   : > { %257 = vst [vmem:[%s2011_s8 + $0xe0] sm:$0xff] %v256_v28  ;;  %259 = vst [vmem:[%s2011_s8 + $0xe8] sm:$0xff] %v258_v29  ;;  %v262_v31 = vld [vmem:[%s2006_s7 + $0x1e8] sm:$0xff]  ;;  %v264_v32 = vld [vmem:[%s2006_s7 + $0x1f0] sm:$0xff] }
  0x23   : > { %261 = vst [vmem:[%s2011_s8 + $0xf0] sm:$0xff] %v260_v30  ;;  %263 = vst [vmem:[%s2011_s8 + $0xf8] sm:$0xff] %v262_v31  ;;  %v266_v33 = vld [vmem:[%s2006_s7 + $0x1f8] sm:$0xff]  ;;  %v268_v34 = vld [vmem:[%s2006_s7 + $0x200] sm:$0xff] }
  0x24   : > { %265 = vst [vmem:[%s2011_s8 + $0x100] sm:$0xff] %v264_v32  ;;  %v270_v35 = vld [vmem:[%s2006_s7 + $0x230] sm:$0xff]  ;;  %267 = vst [vmem:[%s2011_s8 + $0x108] sm:$0xff] %v266_v33  ;;  %v272_v36 = vld [vmem:[%s2006_s7 + $0x238] sm:$0xff] }
  0x25   : > { %269 = vst [vmem:[%s2011_s8 + $0x110] sm:$0xff] %v268_v34  ;;  %271 = vst [vmem:[%s2011_s8 + $0x118] sm:$0xff] %v270_v35  ;;  %v274_v37 = vld [vmem:[%s2006_s7 + $0x240] sm:$0xff]  ;;  %v276_v38 = vld [vmem:[%s2006_s7 + $0x248] sm:$0xff] }
  0x26   : > { %273 = vst [vmem:[%s2011_s8 + $0x120] sm:$0xff] %v272_v36  ;;  %275 = vst [vmem:[%s2011_s8 + $0x128] sm:$0xff] %v274_v37  ;;  %v278_v39 = vld [vmem:[%s2006_s7 + $0x250] sm:$0xff] }
  0x27   : > { %277 = vst [vmem:[%s2011_s8 + $0x130] sm:$0xff] %v276_v38  ;;  %279 = vst [vmem:[%s2011_s8 + $0x138] sm:$0xff] %v278_v39 }
  0x28 PF: > { %p1668_p7 = scmp.ge.s32.totalorder %s1932_s20, 1  ;;  %p284_p8 = scmp.lt.s32.totalorder %s1932_s20, 3 }
  0x2a   : > { %p285_p9 = pnand %p1668_p7, %p284_p8 }
  0x2c   : > { %288 = sbr.rel (%p285_p9) target bundleno = 591 (0x24f), region = 59 }
  0x31   : > { %s291_s9 = sand.u32 1, %s1924_s18   ;;  %v2930_v40 = vmov 0.0   ;;  %v1935_v41 = vmov 0   ;;  %v372_v42 = vld [vmem:[%s2926_s2 + $0x28] sm:$0xff]  ;;  %v374_v43 = vld [vmem:[%s2926_s2 + $0x38] sm:$0xff]  ;;  %v2230_v12 = vld [vmem:[%s2925_s1] sm:$0xff] }
  0x32   : > { %s2093_s10 = smul.u32 320, %s291_s9  ;;  %504 = vmatprep.mubr.f32.mxu0 %v2930_v40  ;;  %617 = vmatprep.mubr.f32.mxu1 %v2930_v40  ;;  %vm415_vm0 = vcmask 523264   ;;  %v371_v14 = vld [vmem:[%s2926_s2 + $0x20] sm:$0xff]  ;;  %v373_v15 = vld [vmem:[%s2926_s2 + $0x30] sm:$0xff]  ;;  %v2252_v16 = vld [vmem:[%s2925_s1 + $0x8] sm:$0xff] }
  0x33   : > { %1879 = vset.pattern.permute.xlu1 %v1935_v41  ;;  %1878 = vset.pattern.permute.xlu0 %v1935_v41  ;;  %v369_v18 = vld [vmem:[%s2926_s2 + $0x10] sm:$0xff]  ;;  %v370_v19 = vld [vmem:[%s2926_s2 + $0x18] sm:$0xff]  ;;  %v367_v22 = vld [vmem:[%s2926_s2] sm:$0xff] }
  0x34   : > { %402 = vperm.xlu1 %1879, %v372_v42   ;;  %s2104_s15 = scalar_lea.vmem [#allocation2], %s2093_s10  ;;  %412 = vperm.xlu0 %1878, %v374_v43   ;;  %v2270_v20 = vld [vmem:[%s2925_s1 + $0x10] sm:$0xff]  ;;  %v368_v23 = vld [vmem:[%s2926_s2 + $0x8] sm:$0xff]  ;;  %v362_v24 = vld [vmem:[%s2925_s1 + $0x18] sm:$0xff]  ;;  %s2678_s6 = scalar_lea.vmem [#allocation3], %s2093_s10 }
  0x35   : > { %v2107_v44 = vld [vmem:[%s2104_s15 + $0x120] sm:$0xff]  ;;  %v357_v45 = vld [vmem:[%s2104_s15 + $0x130] sm:$0xff]  ;;  %v2111_v46 = vld [vmem:[%s2104_s15 + $0x118] sm:$0xff]  ;;  %s1761_s10 = smul.u32 (%p1996_p5), 40, %s1663_s21 }
  0x36   : > { %2954 = vst [vmem:[#allocation4_spill] sm:$0xff] %v2107_v44  ;;  %2955 = vst [vmem:[#allocation5_spill] sm:$0xff] %v2111_v46  ;;  %456 = vmatprep.subr.mxu0 %v2107_v44  ;;  %569 = vmatprep.subr.mxu1 %v357_v45  ;;  %v2115_v47 = vld [vmem:[%s2104_s15 + $0x128] sm:$0xff]  ;;  %v2118_v48 = vld [vmem:[%s2104_s15 + $0xf8] sm:$0xff] }
  0x37   : > { %2956 = vst [vmem:[#allocation6_spill] sm:$0xff] %v2115_v47  ;;  %2957 = vst [vmem:[#allocation7_spill] sm:$0xff] %v2118_v48  ;;  %v2121_v49 = vld [vmem:[%s2104_s15 + $0x108] sm:$0xff]  ;;  %457 = vmatpush1.msra.mxu0 %v2111_v46  ;;  %570 = vmatpush1.msra.mxu1 %v2115_v47  ;;  %v2126_v50 = vld [vmem:[%s2104_s15 + $0xf0] sm:$0xff] }
  0x38   : > { %2958 = vst [vmem:[#allocation8_spill] sm:$0xff] %v2121_v49  ;;  %2959 = vst [vmem:[#allocation9_spill] sm:$0xff] %v2126_v50  ;;  %v2129_v51 = vld [vmem:[%s2104_s15 + $0x100] sm:$0xff]  ;;  %v2132_v52 = vld [vmem:[%s2104_s15 + $0xd0] sm:$0xff]  ;;  %458 = vmatprep.subr.mxu0 %v2118_v48  ;;  %571 = vmatprep.subr.mxu1 %v2121_v49 }
  0x39   : > { %2960 = vst [vmem:[#allocation10_spill] sm:$0xff] %v2129_v51  ;;  %2961 = vst [vmem:[#allocation11_spill] sm:$0xff] %v2132_v52  ;;  %v2137_v53 = vld [vmem:[%s2104_s15 + $0xe0] sm:$0xff]  ;;  %v2140_v54 = vld [vmem:[%s2104_s15 + $0xc8] sm:$0xff]  ;;  %459 = vmatpush1.msra.mxu0 %v2126_v50  ;;  %572 = vmatpush1.msra.mxu1 %v2129_v51 }
  0x3a   : > { %2962 = vst [vmem:[#allocation12_spill] sm:$0xff] %v2137_v53  ;;  %v2143_v55 = vld [vmem:[%s2104_s15 + $0xd8] sm:$0xff]  ;;  %v2148_v56 = vld [vmem:[%s2104_s15 + $0xa8] sm:$0xff]  ;;  %460 = vmatprep.subr.mxu0 %v2132_v52  ;;  %573 = vmatprep.subr.mxu1 %v2137_v53  ;;  %v2156_v58 = vld [vmem:[%s2104_s15 + $0xa0] sm:$0xff] }
  0x3b   : > { %v2151_v57 = vld [vmem:[%s2104_s15 + $0xb8] sm:$0xff]  ;;  %v2159_v59 = vld [vmem:[%s2104_s15 + $0xb0] sm:$0xff]  ;;  %461 = vmatpush1.msra.mxu0 %v2140_v54  ;;  %574 = vmatpush1.msra.mxu1 %v2143_v55  ;;  %v2164_v60 = vld [vmem:[%s2104_s15 + $0x80] sm:$0xff] }
  0x3c   : > { %2963 = vst [vmem:[#allocation13_spill] sm:$0xff] %v2164_v60  ;;  %v2167_v61 = vld [vmem:[%s2104_s15 + $0x90] sm:$0xff]  ;;  %462 = vmatprep.subr.mxu0 %v2148_v56  ;;  %575 = vmatprep.subr.mxu1 %v2151_v57  ;;  %v2172_v62 = vld [vmem:[%s2104_s15 + $0x78] sm:$0xff]  ;;  %v2175_v63 = vld [vmem:[%s2104_s15 + $0x88] sm:$0xff] }
  0x3d   : > { %2964 = vst [vmem:[#allocation14_spill] sm:$0xff] %v2167_v61  ;;  %2965 = vst [vmem:[#allocation15_spill] sm:$0xff] %v2172_v62  ;;  %463 = vmatpush1.msra.mxu0 %v2156_v58  ;;  %576 = vmatpush1.msra.mxu1 %v2159_v59  ;;  %v2180_v0 = vld [vmem:[%s2104_s15 + $0x58] sm:$0xff]  ;;  %v2183_v1 = vld [vmem:[%s2104_s15 + $0x68] sm:$0xff] }
  0x3e   : > { %2966 = vst [vmem:[#allocation16_spill] sm:$0xff] %v2175_v63  ;;  %2967 = vst [vmem:[#allocation17_spill] sm:$0xff] %v2180_v0  ;;  %464 = vmatprep.subr.mxu0 %v2164_v60  ;;  %577 = vmatprep.subr.mxu1 %v2167_v61  ;;  %v2188_v2 = vld [vmem:[%s2104_s15 + $0x50] sm:$0xff]  ;;  %v2191_v3 = vld [vmem:[%s2104_s15 + $0x60] sm:$0xff] }
  0x3f   : > { %2968 = vst [vmem:[#allocation18_spill] sm:$0xff] %v2183_v1  ;;  %2969 = vst [vmem:[#allocation19_spill] sm:$0xff] %v2188_v2  ;;  %465 = vmatpush1.msra.mxu0 %v2172_v62  ;;  %578 = vmatpush1.msra.mxu1 %v2175_v63  ;;  %v2196_v4 = vld [vmem:[%s2104_s15 + $0x30] sm:$0xff]  ;;  %v2199_v5 = vld [vmem:[%s2104_s15 + $0x40] sm:$0xff] }
  0x40   : > { %2970 = vst [vmem:[#allocation20_spill] sm:$0xff] %v2191_v3  ;;  %2971 = vst [vmem:[#allocation21_spill] sm:$0xff] %v2199_v5  ;;  %466 = vmatprep.subr.mxu0 %v2180_v0  ;;  %579 = vmatprep.subr.mxu1 %v2183_v1  ;;  %v2204_v6 = vld [vmem:[%s2104_s15 + $0x28] sm:$0xff]  ;;  %v2207_v7 = vld [vmem:[%s2104_s15 + $0x38] sm:$0xff] }
  0x41   : > { %467 = vmatpush1.msra.mxu0 %v2188_v2  ;;  %580 = vmatpush1.msra.mxu1 %v2191_v3  ;;  %v2212_v8 = vld [vmem:[%s2104_s15 + $0x8] sm:$0xff]  ;;  %v2215_v9 = vld [vmem:[%s2104_s15 + $0x18] sm:$0xff]  ;;  %v2220_v10 = vld [vmem:[%s2104_s15] sm:$0xff] }
  0x42   : > { %468 = vmatprep.subr.mxu0 %v2196_v4  ;;  %581 = vmatprep.subr.mxu1 %v2199_v5  ;;  %v2223_v11 = vld [vmem:[%s2104_s15 + $0x10] sm:$0xff]  ;;  %v358_v13 = vld [vmem:[%s2104_s15 + $0x138] sm:$0xff]  ;;  %v348_v21 = vld [vmem:[%s2104_s15 + $0xe8] sm:$0xff] }
  0x43   : > { %469 = vmatpush1.msra.mxu0 %v2204_v6  ;;  %582 = vmatpush1.msra.mxu1 %v2207_v7  ;;  %v353_v17 = vld [vmem:[%s2104_s15 + $0x110] sm:$0xff]  ;;  %v343_v25 = vld [vmem:[%s2104_s15 + $0xc0] sm:$0xff]  ;;  %v820_v26 = vld [vmem:[%s2928_s4 + $0x8] sm:$0xff] }
  0x44   : > { %470 = vmatprep.subr.mxu0 %v2212_v8  ;;  %583 = vmatprep.subr.mxu1 %v2215_v9  ;;  %v819_v27 = vld [vmem:[%s2928_s4] sm:$0xff]  ;;  %v338_v29 = vld [vmem:[%s2104_s15 + $0x98] sm:$0xff]  ;;  %v821_v31 = vld [vmem:[%s2928_s4 + $0x10] sm:$0xff] }
  0x45   : > { %471 = vmatpush1.msra.mxu0 %v2220_v10  ;;  %584 = vmatpush1.msra.mxu1 %v2223_v11  ;;  %v363_v28 = vld [vmem:[%s2925_s1 + $0x20] sm:$0xff]  ;;  %v822_v30 = vld [vmem:[%s2928_s4 + $0x18] sm:$0xff]  ;;  %v364_v32 = vld [vmem:[%s2925_s1 + $0x28] sm:$0xff] }
  0x46   : > { %1669 = vmatmul.mubr.msk.f32.vlgmr.msra.gmra.mxu0 %vm415_vm0, %v2230_v12  ;;  %1677 = vmatmul.mubr.msk.f32.vlgmr.msra.gmra.mxu1 %vm415_vm0, %v2230_v12  ;;  %v333_v33 = vld [vmem:[%s2104_s15 + $0x70] sm:$0xff]  ;;  %v824_v34 = vld [vmem:[%s2928_s4 + $0x28] sm:$0xff]  ;;  %v823_v35 = vld [vmem:[%s2928_s4 + $0x20] sm:$0xff] }
  0x47   : > { %510 = vmatprep.mubr.f32.mxu0 %v2930_v40  ;;  %623 = vmatprep.mubr.f32.mxu1 %v2930_v40  ;;  %v365_v36 = vld [vmem:[%s2925_s1 + $0x30] sm:$0xff]  ;;  %v328_v37 = vld [vmem:[%s2104_s15 + $0x48] sm:$0xff]  ;;  %v826_v38 = vld [vmem:[%s2928_s4 + $0x38] sm:$0xff] }
  0x48   : > { %1794 = vmatprep.subr.mxu0 %v358_v13  ;;  %397 = vperm.xlu1 %1879, %v371_v14   ;;  %v825_v39 = vld [vmem:[%s2928_s4 + $0x30] sm:$0xff]  ;;  %v366_v41 = vld [vmem:[%s2925_s1 + $0x38] sm:$0xff]  ;;  %v323_v42 = vld [vmem:[%s2104_s15 + $0x20] sm:$0xff] }
  0x49   : > { %1795 = vmatpush3.msra.mxu0 %v358_v13  ;;  %407 = vperm.xlu0 %1878, %v373_v15  }
  0x4a   : > { %1670 = vmatmul.mubr.msk.f32.gmra.mxu0 %vm415_vm0, %v2252_v16  ;;  %1678 = vmatmul.mubr.msk.f32.gmra.mxu1 %vm415_vm0, %v2252_v16 }
  0x4b   : > { %516 = vmatprep.mubr.f32.mxu0 %v2930_v40  ;;  %629 = vmatprep.mubr.f32.mxu1 %v2930_v40 }
  0x4c   : > { %1796 = vmatprep.subr.mxu0 %v353_v17  ;;  %387 = vperm.xlu1 %1879, %v369_v18  }
  0x4d   : > { %1797 = vmatpush3.msra.mxu0 %v353_v17  ;;  %392 = vperm.xlu0 %1878, %v370_v19  }
  0x4e   : > { %1671 = vmatmul.mubr.msk.f32.gmra.mxu0 %vm415_vm0, %v2270_v20  ;;  %1679 = vmatmul.mubr.msk.f32.gmra.mxu1 %vm415_vm0, %v2270_v20 }
  0x4f   : > { %522 = vmatprep.mubr.f32.mxu0 %v2930_v40  ;;  %635 = vmatprep.mubr.f32.mxu1 %v2930_v40 }
  0x50   : > { %1798 = vmatprep.subr.mxu0 %v348_v21  ;;  %377 = vperm.xlu1 %1879, %v367_v22  }
  0x51   : > { %1799 = vmatpush3.msra.mxu0 %v348_v21  ;;  %382 = vperm.xlu0 %1878, %v368_v23  }
  0x52   : > { %1672 = vmatmul.mubr.msk.f32.gmra.mxu0 %vm415_vm0, %v362_v24  ;;  %1680 = vmatmul.mubr.msk.f32.gmra.mxu1 %vm415_vm0, %v362_v24 }
  0x53   : > { %528 = vmatprep.mubr.f32.mxu0 %v2930_v40  ;;  %641 = vmatprep.mubr.f32.mxu1 %v2930_v40 }
  0x54   : > { %1800 = vmatprep.subr.mxu0 %v343_v25  ;;  %834 = vperm.xlu1 %1879, %v820_v26  }
  0x55   : > { %1801 = vmatpush3.msra.mxu0 %v343_v25  ;;  %829 = vperm.xlu0 %1878, %v819_v27  }
  0x56   : > { %1673 = vmatmul.mubr.msk.f32.gmra.mxu0 %vm415_vm0, %v363_v28  ;;  %1681 = vmatmul.mubr.msk.f32.gmra.mxu1 %vm415_vm0, %v363_v28 }
  0x57   : > { %534 = vmatprep.mubr.f32.mxu0 %v2930_v40  ;;  %647 = vmatprep.mubr.f32.mxu1 %v2930_v40 }
  0x58   : > { %1802 = vmatprep.subr.mxu0 %v338_v29  ;;  %844 = vperm.xlu1 %1879, %v822_v30  }
  0x59   : > { %1803 = vmatpush3.msra.mxu0 %v338_v29  ;;  %839 = vperm.xlu0 %1878, %v821_v31  }
  0x5a   : > { %1674 = vmatmul.mubr.msk.f32.gmra.mxu0 %vm415_vm0, %v364_v32  ;;  %1682 = vmatmul.mubr.msk.f32.gmra.mxu1 %vm415_vm0, %v364_v32 }
  0x5b   : > { %540 = vmatprep.mubr.f32.mxu0 %v2930_v40  ;;  %653 = vmatprep.mubr.f32.mxu1 %v2930_v40 }
  0x5c   : > { %1804 = vmatprep.subr.mxu0 %v333_v33  ;;  %854 = vperm.xlu1 %1879, %v824_v34  }
  0x5d   : > { %1805 = vmatpush3.msra.mxu0 %v333_v33  ;;  %849 = vperm.xlu0 %1878, %v823_v35  }
  0x5e   : > { %1675 = vmatmul.mubr.msk.f32.gmra.mxu0 %vm415_vm0, %v365_v36  ;;  %1683 = vmatmul.mubr.msk.f32.gmra.mxu1 %vm415_vm0, %v365_v36 }
  0x5f   : > { %546 = vmatprep.mubr.f32.mxu0 %v2930_v40  ;;  %659 = vmatprep.mubr.f32.mxu1 %v2930_v40 }
  0x60   : > { %1806 = vmatprep.subr.mxu0 %v328_v37  ;;  %864 = vperm.xlu1 %1879, %v826_v38  }
  0x61   : > { %1807 = vmatpush3.msra.mxu0 %v328_v37  ;;  %859 = vperm.xlu0 %1878, %v825_v39  }
  0x62   : > { %1676 = vmatmul.mubr.msk.f32.gmra.mxu0 %vm415_vm0, %v366_v41  ;;  %1684 = vmatmul.mubr.msk.f32.gmra.mxu1 %vm415_vm0, %v366_v41 }
  0x63   : > { %1808 = vmatprep.subr.mxu0 %v323_v42  ;;  %1810 = vmatprep.mubr.msk.f32.mxu0 %vm415_vm0, %v2230_v12 }
  0x64   : > { %1809 = vmatpush3.msra.mxu0 %v323_v42  ;;  %955 = vmatprep.mubr.f32.mxu1 %v2930_v40 }
  0x66   : > { %1811 = vmatmul.mubr.msk.f32.vlgmr.msra.gmra.mxu0 %vm415_vm0, %v2252_v16 }
  0x67   : > { %1813 = vmatprep.mubr.msk.f32.mxu0 %vm415_vm0, %v2270_v20 }
  0x6a   : > { %1814 = vmatmul.mubr.msk.f32.gmra.mxu0 %vm415_vm0, %v362_v24 }
  0x6b   : > { %1816 = vmatprep.mubr.msk.f32.mxu0 %vm415_vm0, %v363_v28 }
  0x6e   : > { %1817 = vmatmul.mubr.msk.f32.gmra.mxu0 %vm415_vm0, %v364_v32 }
  0x6f   : > { %1819 = vmatprep.mubr.msk.f32.mxu0 %vm415_vm0, %v365_v36 }
  0x72   : > { %1820 = vmatmul.mubr.msk.f32.gmra.mxu0 %vm415_vm0, %v366_v41 }
  0x73   : > { %1068 = vmatprep.mubr.f32.mxu0 %v2930_v40 }
  0xaf   : > { %v2388_v32 = vpop.permute.xlu0 %412  ;;  %v2390_v35 = vpop.permute.xlu1 %402 }
  0xc3   : > { %v2394_v61 = vpop.permute.xlu1 %397 }
  0xc4   : > { %v2392_v41 = vpop.permute.xlu0 %407 }
  0xc8   : > { %v2406_v50 = vpop.permute.xlu0 %392 }
 0x106   : > { %v2360_v43 = vpop.f32.mrf.mxu0  ;;  %v2362_v45 = vpop.f32.mrf.mxu1 }
 0x108   : > { %v2364_v12 = vpop.f32.mrf.mxu0  ;;  %v2366_v13 = vpop.f32.mrf.mxu1 }
 0x10a   : > { %v2368_v14 = vpop.f32.mrf.mxu0  ;;  %v2370_v15 = vpop.f32.mrf.mxu1 }
 0x10c   : > { %v2372_v16 = vpop.f32.mrf.mxu0  ;;  %v2374_v17 = vpop.f32.mrf.mxu1 }
 0x10e   : > { %v2376_v18 = vpop.f32.mrf.mxu0  ;;  %v2378_v19 = vpop.f32.mrf.mxu1 }
 0x110   : > { %v2380_v20 = vpop.f32.mrf.mxu0  ;;  %v2382_v21 = vpop.f32.mrf.mxu1 }
 0x112   : > { %v2384_v22 = vpop.f32.mrf.mxu0  ;;  %v2386_v23 = vpop.f32.mrf.mxu1 }
 0x114   : > { %v526_v24 = vpop.f32.mrf.mxu0  ;;  %v639_v25 = vpop.f32.mrf.mxu1 }
 0x116   : > { %v530_v26 = vpop.f32.mrf.mxu0  ;;  %v643_v27 = vpop.f32.mrf.mxu1 }
 0x118   : > { %v532_v28 = vpop.f32.mrf.mxu0  ;;  %v645_v29 = vpop.f32.mrf.mxu1 }
 0x119   : > { %v646_v5 = vadd.f32 %v645_v29, %v2394_v61 }
 0x11a   : > { %v536_v30 = vpop.f32.mrf.mxu0  ;;  %v649_v31 = vpop.f32.mrf.mxu1 }
 0x11c   : > { %v538_v33 = vpop.f32.mrf.mxu0  ;;  %v651_v34 = vpop.f32.mrf.mxu1 }
 0x11e   : > { %v542_v36 = vpop.f32.mrf.mxu0  ;;  %v655_v37 = vpop.f32.mrf.mxu1 }
 0x11f   : > { %v543_v48 = vadd.f32 %v542_v36, %v2392_v41  ;;  %v656_v0 = vadd.f32 %v655_v37, %v2392_v41  ;;  %v2414_v36 = vpop.permute.xlu1 %387  ;;  %v533_v37 = vadd.f32 %v532_v28, %v2394_v61  ;;  %v640_v28 = vadd.f32 %v639_v25, %v2406_v50 }
 0x120   : > { %v544_v38 = vpop.f32.mrf.mxu0  ;;  %v657_v39 = vpop.f32.mrf.mxu1 }
 0x121   : > { %v545_v46 = vadd.f32 %v544_v38, %v2392_v41  ;;  %v658_v62 = vadd.f32 %v657_v39, %v2392_v41  ;;  %v537_v39 = vadd.f32 %v536_v30, %v2390_v35  ;;  %v801_v30 = vmax.f32 %v543_v48, 0.0 }
 0x122   : > { %v548_v42 = vpop.f32.mrf.mxu0  ;;  %v661_v40 = vpop.f32.mrf.mxu1  ;;  %v792_v25 = vmax.f32 %v533_v37, 0.0 }
 0x123   : > { %v549_v44 = vadd.f32 %v548_v42, %v2388_v32  ;;  %v662_v60 = vadd.f32 %v661_v40, %v2388_v32  ;;  %v539_v40 = vadd.f32 %v538_v33, %v2390_v35  ;;  %v652_v42 = vadd.f32 %v651_v34, %v2390_v35 }
 0x124   : > { %v550_v47 = vpop.f32.mrf.mxu0  ;;  %v663_v63 = vpop.f32.mrf.mxu1  ;;  %v802_v52 = vmax.f32 %v545_v46, 0.0  ;;  %v804_v33 = vmax.f32 %v658_v62, 0.0  ;;  %v525_v46 = vadd.f32 %v2384_v22, %v2406_v50  ;;  %v638_v62 = vadd.f32 %v2386_v23, %v2406_v50 }
 0x125   : > { %v551_v49 = vadd.f32 %v550_v47, %v2388_v32  ;;  %v664_v1 = vadd.f32 %v663_v63, %v2388_v32  ;;  %v650_v47 = vadd.f32 %v649_v31, %v2390_v35  ;;  %v806_v3 = vmax.f32 %v549_v44, 0.0 }
 0x126   : > { %v2404_v51 = vpop.f32.mrf.mxu0  ;;  %v808_v63 = vmax.f32 %v662_v60, 0.0  ;;  %v803_v31 = vmax.f32 %v656_v0, 0.0  ;;  %v527_v60 = vadd.f32 %v526_v24, %v2406_v50  ;;  %v797_v34 = vmax.f32 %v539_v40, 0.0 }
 0x127   : > { %v807_v2 = vmax.f32 %v551_v49, 0.0  ;;  %v809_v38 = vmax.f32 %v664_v1, 0.0  ;;  %v531_v49 = vadd.f32 %v530_v26, %v2394_v61  ;;  %v644_v1 = vadd.f32 %v643_v27, %v2394_v61 }
 0x128   : > { %v2412_v53 = vpop.f32.mrf.mxu0  ;;  %v799_v29 = vmax.f32 %v652_v42, 0.0  ;;  %v796_v48 = vmax.f32 %v537_v39, 0.0  ;;  %v798_v0 = vmax.f32 %v650_v47, 0.0  ;;  %v521_v24 = vadd.f32 %v2380_v20, %v2414_v36 }
 0x129   : > { %907 = vmatprep.subr.mxu1 %v807_v2  ;;  %1020 = vmatprep.subr.mxu0 %v809_v38  ;;  %v794_v26 = vmax.f32 %v646_v5, 0.0  ;;  %v519_v22 = vadd.f32 %v2376_v18, %v2414_v36  ;;  %v632_v23 = vadd.f32 %v2378_v19, %v2414_v36  ;;  %v791_v27 = vmax.f32 %v531_v49, 0.0  ;;  %v2440_v38 = vpop.permute.xlu1 %377 }
 0x12a   : > { %v2420_v44 = vpop.f32.mrf.mxu0  ;;  %908 = vmatpush1.msra.mxu1 %v806_v3  ;;  %1021 = vmatpush1.msra.mxu0 %v808_v63  ;;  %v2430_v3 = vpop.permute.xlu0 %382  ;;  %v793_v40 = vmax.f32 %v644_v1, 0.0  ;;  %v789_v39 = vmax.f32 %v640_v28, 0.0  ;;  %v786_v47 = vmax.f32 %v525_v46, 0.0  ;;  %v788_v63 = vmax.f32 %v638_v62, 0.0 }
 0x12b   : > { %909 = vmatprep.subr.mxu1 %v802_v52  ;;  %1022 = vmatprep.subr.mxu0 %v804_v33  ;;  %v634_v52 = vadd.f32 %v2382_v21, %v2414_v36  ;;  %v515_v20 = vadd.f32 %v2372_v16, %v2430_v3  ;;  %v628_v5 = vadd.f32 %v2374_v17, %v2430_v3  ;;  %v787_v21 = vmax.f32 %v527_v60, 0.0 }
 0x12c   : > { %v2428_v2 = vpop.f32.mrf.mxu0  ;;  %910 = vmatpush1.msra.mxu1 %v801_v30  ;;  %1023 = vmatpush1.msra.mxu0 %v803_v31  ;;  %v513_v18 = vadd.f32 %v2368_v14, %v2430_v3  ;;  %v626_v19 = vadd.f32 %v2370_v15, %v2430_v3  ;;  %v509_v16 = vadd.f32 %v2364_v12, %v2440_v38  ;;  %v782_v33 = vmax.f32 %v521_v24, 0.0 }
 0x12d   : > { %911 = vmatprep.subr.mxu1 %v797_v34  ;;  %1024 = vmatprep.subr.mxu0 %v799_v29  ;;  %v622_v17 = vadd.f32 %v2366_v13, %v2440_v38  ;;  %v784_v49 = vmax.f32 %v634_v52, 0.0  ;;  %v507_v14 = vadd.f32 %v2360_v43, %v2440_v38  ;;  %v620_v15 = vadd.f32 %v2362_v45, %v2440_v38 }
 0x12e   : > { %v1818_v42 = vpop.f32.mrf.mxu0  ;;  %912 = vmatpush1.msra.mxu1 %v796_v48  ;;  %1025 = vmatpush1.msra.mxu0 %v798_v0  ;;  %v781_v1 = vmax.f32 %v519_v22, 0.0  ;;  %v783_v30 = vmax.f32 %v632_v23, 0.0  ;;  %v777_v60 = vmax.f32 %v515_v20, 0.0  ;;  %v779_v12 = vmax.f32 %v628_v5, 0.0  ;;  %v2463_v0 = vld [vmem:[%s2927_s3] sm:$0xff]  ;;  %v818_v20 = vld [vmem:[%s2927_s3 + $0x38] sm:$0xff]  ;;  %v2537_v5 = vpop.permute.xlu0 %829 }
 0x12f   : > { %913 = vmatprep.subr.mxu1 %v792_v25  ;;  %1026 = vmatprep.subr.mxu0 %v794_v26  ;;  %v776_v13 = vmax.f32 %v513_v18, 0.0  ;;  %v778_v28 = vmax.f32 %v626_v19, 0.0  ;;  %v772_v43 = vmax.f32 %v509_v16, 0.0  ;;  %v774_v46 = vmax.f32 %v622_v17, 0.0  ;;  %v812_v26 = vld [vmem:[%s2927_s3 + $0x8] sm:$0xff] }
 0x130   : > { %v752_v37 = vpop.f32.mrf.mxu0  ;;  %914 = vmatpush1.msra.mxu1 %v791_v27  ;;  %1027 = vmatpush1.msra.mxu0 %v793_v40  ;;  %v771_v45 = vmax.f32 %v507_v14, 0.0  ;;  %v773_v62 = vmax.f32 %v620_v15, 0.0  ;;  %v2972_v25 = vmov 0.0   ;;  %v813_v27 = vld [vmem:[%s2927_s3 + $0x10] sm:$0xff]  ;;  %v814_v40 = vld [vmem:[%s2927_s3 + $0x18] sm:$0xff]  ;;  %v2543_v14 = vpop.permute.xlu1 %834 }
 0x131   : > { %915 = vmatprep.subr.mxu1 %v787_v21  ;;  %1028 = vmatprep.subr.mxu0 %v789_v39 }
 0x132   : > { %v1821_v31 = vpop.f32.mrf.mxu0  ;;  %916 = vmatpush1.msra.mxu1 %v786_v47  ;;  %1029 = vmatpush1.msra.mxu0 %v788_v63 }
 0x133   : > { %917 = vmatprep.subr.mxu1 %v782_v33  ;;  %1030 = vmatprep.subr.mxu0 %v784_v49  ;;  %v768_v34 = vadd.f32 %v1821_v31, %v2388_v32  ;;  %v758_v32 = vadd.f32 %v1818_v42, %v2390_v35  ;;  %v748_v35 = vadd.f32 %v2420_v44, %v2406_v50  ;;  %v816_v42 = vld [vmem:[%s2927_s3 + $0x28] sm:$0xff] }
 0x134   : > { %v762_v29 = vpop.f32.mrf.mxu0  ;;  %918 = vmatpush1.msra.mxu1 %v781_v1  ;;  %1031 = vmatpush1.msra.mxu0 %v783_v30  ;;  %v738_v50 = vadd.f32 %v2404_v51, %v2430_v3 }
 0x135   : > { %919 = vmatprep.subr.mxu1 %v777_v60  ;;  %1032 = vmatprep.subr.mxu0 %v779_v12  ;;  %v763_v48 = vadd.f32 %v762_v29, %v2392_v41  ;;  %v810_v24 = vmax.f32 %v768_v34, 0.0  ;;  %v753_v41 = vadd.f32 %v752_v37, %v2394_v61  ;;  %v800_v22 = vmax.f32 %v758_v32, 0.0 }
 0x136   : > { %920 = vmatpush1.msra.mxu1 %v776_v13  ;;  %1033 = vmatpush1.msra.mxu0 %v778_v28  ;;  %v743_v61 = vadd.f32 %v2428_v2, %v2414_v36  ;;  %v790_v44 = vmax.f32 %v748_v35, 0.0  ;;  %v733_v36 = vadd.f32 %v2412_v53, %v2440_v38  ;;  %v780_v51 = vmax.f32 %v738_v50, 0.0  ;;  %v815_v53 = vld [vmem:[%s2927_s3 + $0x20] sm:$0xff]  ;;  %v817_v38 = vld [vmem:[%s2927_s3 + $0x30] sm:$0xff] }
 0x137   : > { %921 = vmatprep.subr.mxu1 %v772_v43  ;;  %1034 = vmatprep.subr.mxu0 %v774_v46  ;;  %v805_v52 = vmax.f32 %v763_v48, 0.0  ;;  %v795_v23 = vmax.f32 %v753_v41, 0.0  ;;  %v2553_v46 = vpop.permute.xlu0 %839 }
 0x138   : > { %922 = vmatpush1.msra.mxu1 %v771_v45  ;;  %1035 = vmatpush1.msra.mxu0 %v773_v62  ;;  %v785_v2 = vmax.f32 %v743_v61, 0.0  ;;  %v775_v3 = vmax.f32 %v733_v36, 0.0  ;;  %2973 = vst [vmem:[#allocation22_spill] sm:$0xff] %v2553_v46 }
 0x139   : > { %1693 = vmatmul.mubr.msk.f32.vlgmr.msra.gmra.mxu1 %vm415_vm0, %v2463_v0  ;;  %1701 = vmatmul.mubr.msk.f32.vlgmr.msra.gmra.mxu0 %vm415_vm0, %v2463_v0 }
 0x13a   : > { %1822 = vmatprep.subr.mxu1 %v810_v24  ;;  %961 = vmatprep.mubr.f32.mxu1 %v2972_v25 }
 0x13b   : > { %1823 = vmatpush3.msra.mxu1 %v810_v24  ;;  %1074 = vmatprep.mubr.f32.mxu0 %v2972_v25 }
 0x13c   : > { %1824 = vmatprep.subr.mxu1 %v805_v52 }
 0x13d   : > { %1825 = vmatpush3.msra.mxu1 %v805_v52  ;;  %1702 = vmatmul.mubr.msk.f32.gmra.mxu0 %vm415_vm0, %v812_v26 }
 0x13e   : > { %1694 = vmatmul.mubr.msk.f32.gmra.mxu1 %vm415_vm0, %v812_v26  ;;  %1826 = vmatprep.subr.mxu1 %v800_v22 }
 0x13f   : > { %1827 = vmatpush3.msra.mxu1 %v800_v22  ;;  %967 = vmatprep.mubr.f32.mxu1 %v2972_v25 }
 0x140   : > { %1828 = vmatprep.subr.mxu1 %v795_v23  ;;  %1080 = vmatprep.mubr.f32.mxu0 %v2972_v25 }
 0x141   : > { %1829 = vmatpush3.msra.mxu1 %v795_v23  ;;  %1703 = vmatmul.mubr.msk.f32.gmra.mxu0 %vm415_vm0, %v813_v27 }
 0x142   : > { %1695 = vmatmul.mubr.msk.f32.gmra.mxu1 %vm415_vm0, %v813_v27  ;;  %1830 = vmatprep.subr.mxu1 %v790_v44 }
 0x143   : > { %1831 = vmatpush3.msra.mxu1 %v790_v44  ;;  %973 = vmatprep.mubr.f32.mxu1 %v2972_v25 }
 0x144   : > { %1832 = vmatprep.subr.mxu1 %v785_v2  ;;  %1086 = vmatprep.mubr.f32.mxu0 %v2972_v25 }
 0x145   : > { %1833 = vmatpush3.msra.mxu1 %v785_v2  ;;  %1704 = vmatmul.mubr.msk.f32.gmra.mxu0 %vm415_vm0, %v814_v40 }
 0x146   : > { %1696 = vmatmul.mubr.msk.f32.gmra.mxu1 %vm415_vm0, %v814_v40  ;;  %1834 = vmatprep.subr.mxu1 %v780_v51 }
 0x147   : > { %1835 = vmatpush3.msra.mxu1 %v780_v51  ;;  %979 = vmatprep.mubr.f32.mxu1 %v2972_v25 }
 0x148   : > { %1836 = vmatprep.subr.mxu1 %v775_v3  ;;  %1092 = vmatprep.mubr.f32.mxu0 %v2972_v25 }
 0x149   : > { %1837 = vmatpush3.msra.mxu1 %v775_v3  ;;  %1705 = vmatmul.mubr.msk.f32.gmra.mxu0 %vm415_vm0, %v815_v53 }
 0x14a   : > { %1697 = vmatmul.mubr.msk.f32.gmra.mxu1 %vm415_vm0, %v815_v53  ;;  %1098 = vmatprep.mubr.f32.mxu0 %v2972_v25 }
 0x14b   : > { %985 = vmatprep.mubr.f32.mxu1 %v2972_v25 }
 0x14d   : > { %1706 = vmatmul.mubr.msk.f32.gmra.mxu0 %vm415_vm0, %v816_v42 }
 0x14e   : > { %1698 = vmatmul.mubr.msk.f32.gmra.mxu1 %vm415_vm0, %v816_v42  ;;  %1104 = vmatprep.mubr.f32.mxu0 %v2972_v25 }
 0x14f   : > { %991 = vmatprep.mubr.f32.mxu1 %v2972_v25 }
 0x151   : > { %1707 = vmatmul.mubr.msk.f32.gmra.mxu0 %vm415_vm0, %v817_v38 }
 0x152   : > { %1699 = vmatmul.mubr.msk.f32.gmra.mxu1 %vm415_vm0, %v817_v38  ;;  %1110 = vmatprep.mubr.f32.mxu0 %v2972_v25 }
 0x153   : > { %997 = vmatprep.mubr.f32.mxu1 %v2972_v25 }
 0x155   : > { %1708 = vmatmul.mubr.msk.f32.gmra.mxu0 %vm415_vm0, %v818_v20 }
 0x156   : > { %1700 = vmatmul.mubr.msk.f32.gmra.mxu1 %vm415_vm0, %v818_v20 }
 0x157   : > { %1838 = vmatprep.mubr.msk.f32.mxu1 %vm415_vm0, %v2463_v0 }
 0x15a   : > { %1839 = vmatmul.mubr.msk.f32.vlgmr.msra.gmra.mxu1 %vm415_vm0, %v812_v26 }
 0x15b   : > { %1841 = vmatprep.mubr.msk.f32.mxu1 %vm415_vm0, %v813_v27 }
 0x15e   : > { %1842 = vmatmul.mubr.msk.f32.gmra.mxu1 %vm415_vm0, %v814_v40 }
 0x15f   : > { %1844 = vmatprep.mubr.msk.f32.mxu1 %vm415_vm0, %v815_v53 }
 0x162   : > { %1845 = vmatmul.mubr.msk.f32.gmra.mxu1 %vm415_vm0, %v816_v42 }
 0x163   : > { %1847 = vmatprep.mubr.msk.f32.mxu1 %vm415_vm0, %v817_v38 }
 0x166   : > { %1848 = vmatmul.mubr.msk.f32.gmra.mxu1 %vm415_vm0, %v818_v20 }
 0x1f9   : > { %v957_v21 = vpop.f32.mrf.mxu1  ;;  %v1070_v39 = vpop.f32.mrf.mxu0 }
 0x1fa   : > { %v958_v18 = vadd.f32 %v957_v21, %v2537_v5  ;;  %v1071_v19 = vadd.f32 %v1070_v39, %v2537_v5 }
 0x1fb   : > { %v959_v47 = vpop.f32.mrf.mxu1  ;;  %v1072_v63 = vpop.f32.mrf.mxu0 }
 0x1fc   : > { %v1717_v37 = vclamps-f32 %v958_v18, 0.01  ;;  %v1719_v16 = vclamps-f32 %v1071_v19, 0.01  ;;  %v960_v17 = vadd.f32 %v959_v47, %v2537_v5  ;;  %v1073_v33 = vadd.f32 %v1072_v63, %v2537_v5  ;;  %v2588_v47 = vpop.permute.xlu1 %844 }
 0x1fd   : > { %v1076_v49 = vpop.f32.mrf.mxu0  ;;  %2974 = vst [vmem:[#allocation23_spill] sm:$0xff] %v2588_v47 }
 0x1fe   : > { %v1302_v15 = vsub.f32 %v958_v18, %v1717_v37  ;;  %v1304_v1 = vsub.f32 %v1071_v19, %v1719_v16  ;;  %v1718_v30 = vclamps-f32 %v960_v17, 0.01  ;;  %v1720_v31 = vclamps-f32 %v1073_v33, 0.01  ;;  %v963_v60 = vpop.f32.mrf.mxu1 }
 0x1ff   : > { %v964_v12 = vadd.f32 %v963_v60, %v2543_v14  ;;  %v1077_v13 = vadd.f32 %v1076_v49, %v2543_v14  ;;  %v1078_v28 = vpop.f32.mrf.mxu0 }
 0x200   : > { %v2548_v34 = vmul.f32 %v1302_v15, %v2220_v10  ;;  %v2551_v29 = vmul.f32 %v1302_v15, %v2156_v58  ;;  %v965_v43 = vpop.f32.mrf.mxu1  ;;  %v1303_v45 = vsub.f32 %v960_v17, %v1718_v30  ;;  %v1305_v62 = vsub.f32 %v1073_v33, %v1720_v31 }
 0x201   : > { %v1722_v48 = vclamps-f32 %v964_v12, 0.01  ;;  %v1724_v0 = vclamps-f32 %v1077_v13, 0.01  ;;  %v1082_v32 = vpop.f32.mrf.mxu0  ;;  %v2556_v24 = vmul.f32 %v1304_v1, %v2223_v11  ;;  %v966_v41 = vadd.f32 %v965_v43, %v2543_v14 }
 0x202   : > { %v1079_v52 = vadd.f32 %v1078_v28, %v2543_v14  ;;  %v969_v25 = vpop.f32.mrf.mxu1  ;;  %v1083_v26 = vadd.f32 %v1082_v32, %v2553_v46  ;;  %v2562_v35 = vmul.f32 %v1304_v1, %v2159_v59  ;;  %v2565_v22 = vmul.f32 %v1303_v45, %v2212_v8  ;;  %v2976_v28 = vld [vmem:[#allocation21_spill] sm:$0xff]  ;;  %v2978_v32 = vld [vmem:[#allocation20_spill] sm:$0xff] }
 0x203   : > { %v2568_v61 = vmul.f32 %v1303_v45, %v2148_v56  ;;  %v2571_v23 = vmul.f32 %v1305_v62, %v2215_v9  ;;  %v1084_v27 = vpop.f32.mrf.mxu0  ;;  %v1307_v50 = vsub.f32 %v964_v12, %v1722_v48  ;;  %v1309_v44 = vsub.f32 %v1077_v13, %v1724_v0  ;;  %v2975_v12 = vld [vmem:[#allocation11_spill] sm:$0xff] }
 0x204   : > { %v1723_v36 = vclamps-f32 %v966_v41, 0.01  ;;  %v1725_v2 = vclamps-f32 %v1079_v52, 0.01  ;;  %v971_v40 = vpop.f32.mrf.mxu1  ;;  %v970_v51 = vadd.f32 %v969_v25, %v2553_v46  ;;  %v1729_v3 = vclamps-f32 %v1083_v26, 0.01 }
 0x205   : > { %v972_v53 = vadd.f32 %v971_v40, %v2553_v46  ;;  %v1085_v42 = vadd.f32 %v1084_v27, %v2553_v46  ;;  %v1088_v38 = vpop.f32.mrf.mxu0  ;;  %v2577_v20 = vmul.f32 %v1305_v62, %v2151_v57  ;;  %v2580_v21 = vmul.f32 %v1307_v50, %v2204_v6  ;;  %v2977_v62 = vld [vmem:[#allocation12_spill] sm:$0xff]  ;;  %v2994_v46 = vld [vmem:[#allocation6_spill] sm:$0xff] }
 0x206   : > { %v2583_v39 = vmul.f32 %v1307_v50, %v2140_v54  ;;  %v2586_v18 = vmul.f32 %v1309_v44, %v2207_v7  ;;  %v975_v19 = vpop.f32.mrf.mxu1  ;;  %v1308_v63 = vsub.f32 %v966_v41, %v1723_v36  ;;  %v1310_v37 = vsub.f32 %v1079_v52, %v1725_v2  ;;  %v2980_v2 = vld [vmem:[#allocation9_spill] sm:$0xff] }
 0x207   : > { %v1727_v16 = vclamps-f32 %v970_v51, 0.01  ;;  %v1314_v17 = vsub.f32 %v1083_v26, %v1729_v3  ;;  %v1090_v33 = vpop.f32.mrf.mxu0  ;;  %v1728_v49 = vclamps-f32 %v972_v53, 0.01  ;;  %v1730_v15 = vclamps-f32 %v1085_v42, 0.01 }
 0x208   : > { %v976_v1 = vadd.f32 %v975_v19, %v2588_v47  ;;  %v1089_v30 = vadd.f32 %v1088_v38, %v2588_v47  ;;  %v977_v31 = vpop.f32.mrf.mxu1  ;;  %v2593_v54 = vmul.f32 %v1309_v44, %v2143_v55  ;;  %v2596_v60 = vmul.f32 %v1308_v63, %v2196_v4  ;;  %v2979_v44 = vld [vmem:[#allocation19_spill] sm:$0xff]  ;;  %v2981_v3 = vld [vmem:[#allocation10_spill] sm:$0xff] }
 0x209   : > { %v2599_v13 = vmul.f32 %v1308_v63, %v2975_v12  ;;  %v2602_v43 = vmul.f32 %v1310_v37, %v2976_v28  ;;  %v1094_v45 = vpop.f32.mrf.mxu0  ;;  %v2605_v48 = vmul.f32 %v1310_v37, %v2977_v62  ;;  %v1312_v0 = vsub.f32 %v970_v51, %v1727_v16  ;;  %v2982_v51 = vld [vmem:[#allocation17_spill] sm:$0xff]  ;;  %v2623_v63 = vpop.permute.xlu0 %849  ;;  %v2985_v16 = vld [vmem:[#allocation18_spill] sm:$0xff] }
 0x20a   : > { %v2608_v41 = vmul.f32 %v1314_v17, %v2978_v32  ;;  %v1313_v52 = vsub.f32 %v972_v53, %v1728_v49  ;;  %v981_v55 = vpop.f32.mrf.mxu1  ;;  %v1315_v25 = vsub.f32 %v1085_v42, %v1730_v15  ;;  %v1732_v26 = vclamps-f32 %v976_v1, 0.01  ;;  %2983 = vst [vmem:[#allocation11_spill] sm:$0xff] %v2623_v63  ;;  %v2984_v42 = vld [vmem:[#allocation7_spill] sm:$0xff] }
 0x20b   : > { %v1734_v4 = vclamps-f32 %v1089_v30, 0.01  ;;  %v978_v27 = vadd.f32 %v977_v31, %v2588_v47  ;;  %v1096_v50 = vpop.f32.mrf.mxu0  ;;  %v2612_v36 = vmul.f32 %v1312_v0, %v2979_v44  ;;  %v2615_v40 = vmul.f32 %v1312_v0, %v2980_v2  ;;  %v2986_v44 = vld [vmem:[#allocation8_spill] sm:$0xff] }
 0x20c   : > { %v2618_v38 = vmul.f32 %v1314_v17, %v2981_v3  ;;  %v2621_v19 = vmul.f32 %v1313_v52, %v2982_v51  ;;  %v983_v53 = vpop.f32.mrf.mxu1  ;;  %v2626_v37 = vmul.f32 %v1313_v52, %v2984_v42  ;;  %v2629_v49 = vmul.f32 %v1315_v25, %v2985_v16  ;;  %v2988_v3 = vld [vmem:[#allocation15_spill] sm:$0xff]  ;;  %v2990_v51 = vld [vmem:[#allocation5_spill] sm:$0xff] }
 0x20d   : > { %v1317_v15 = vsub.f32 %v976_v1, %v1732_v26  ;;  %v1319_v31 = vsub.f32 %v1089_v30, %v1734_v4  ;;  %v1100_v12 = vpop.f32.mrf.mxu0  ;;  %v1733_v28 = vclamps-f32 %v978_v27, 0.01  ;;  %v1091_v62 = vadd.f32 %v1090_v33, %v2588_v47  ;;  %v2992_v1 = vld [vmem:[#allocation16_spill] sm:$0xff]  ;;  %v2646_v26 = vpop.permute.xlu1 %854 }
 0x20e   : > { %v982_v17 = vadd.f32 %v981_v55, %v2623_v63  ;;  %v1095_v0 = vadd.f32 %v1094_v45, %v2623_v63  ;;  %v987_v32 = vpop.f32.mrf.mxu1  ;;  %v2635_v2 = vmul.f32 %v1315_v25, %v2986_v44  ;;  %v984_v25 = vadd.f32 %v983_v53, %v2623_v63 }
 0x20f   : > { %v2638_v52 = vmul.f32 %v1317_v15, %v2988_v3  ;;  %v2641_v42 = vmul.f32 %v1317_v15, %v2990_v51  ;;  %v2644_v30 = vmul.f32 %v1319_v31, %v2992_v1  ;;  %v1318_v33 = vsub.f32 %v978_v27, %v1733_v28  ;;  %v1102_v3 = vpop.f32.mrf.mxu0  ;;  %v2996_v51 = vld [vmem:[#allocation13_spill] sm:$0xff] }
 0x210   : > { %2987 = vst [vmem:[#allocation21_spill] sm:$0xff] %v2635_v2  ;;  %v1735_v4 = vclamps-f32 %v1091_v62, 0.01  ;;  %v1737_v55 = vclamps-f32 %v982_v17, 0.01  ;;  %v989_v45 = vpop.f32.mrf.mxu1  ;;  %v2649_v47 = vmul.f32 %v1319_v31, %v2994_v46  ;;  %v1097_v44 = vadd.f32 %v1096_v50, %v2623_v63  ;;  %v2998_v50 = vld [vmem:[#allocation14_spill] sm:$0xff] }
 0x211   : > { %2989 = vst [vmem:[#allocation12_spill] sm:$0xff] %v2638_v52  ;;  %2991 = vst [vmem:[#allocation20_spill] sm:$0xff] %v2641_v42  ;;  %v1739_v16 = vclamps-f32 %v1095_v0, 0.01  ;;  %v988_v15 = vadd.f32 %v987_v32, %v2646_v26  ;;  %v2655_v1 = vmul.f32 %v1318_v33, %v2996_v51  ;;  %v1101_v28 = vadd.f32 %v1100_v12, %v2646_v26 }
 0x212   : > { %2993 = vst [vmem:[#allocation19_spill] sm:$0xff] %v2644_v30  ;;  %2995 = vst [vmem:[#allocation9_spill] sm:$0xff] %v2649_v47  ;;  %v2657_v30 = vsub.f32 %v1091_v62, %v1735_v4  ;;  %v1322_v27 = vsub.f32 %v982_v17, %v1737_v55  ;;  %v993_v42 = vpop.f32.mrf.mxu1  ;;  %v1738_v2 = vclamps-f32 %v984_v25, 0.01  ;;  %v1740_v46 = vclamps-f32 %v1097_v44, 0.01 }
 0x213   : > { %v1324_v52 = vsub.f32 %v1095_v0, %v1739_v16  ;;  %v1742_v31 = vclamps-f32 %v988_v15, 0.01  ;;  %v2997_v47 = vld [vmem:[#allocation4_spill] sm:$0xff]  ;;  %v1106_v16 = vpop.f32.mrf.mxu0  ;;  %v1744_v63 = vclamps-f32 %v1101_v28, 0.01 }
 0x214   : > { %v2661_v53 = vmul.f32 %v1318_v33, %v2997_v47  ;;  %v2665_v32 = vmul.f32 %v2657_v30, %v2998_v50  ;;  %v1362_v51 = vmul.f32 %v1322_v27, %v2156_v58  ;;  %v1442_v62 = vmul.f32 %v1322_v27, %v2220_v10  ;;  %v995_v17 = vpop.f32.mrf.mxu1 }
 0x215   : > { %v1364_v12 = vmul.f32 %v1324_v52, %v2159_v59  ;;  %v1444_v0 = vmul.f32 %v1324_v52, %v2223_v11  ;;  %v1323_v4 = vsub.f32 %v984_v25, %v1738_v2  ;;  %v1325_v55 = vsub.f32 %v1097_v44, %v1740_v46 }
 0x216   : > { %2999 = vst [vmem:[#allocation10_spill] sm:$0xff] %v2665_v32  ;;  %v1382_v47 = vsub.f32 %v2548_v34, %v1362_v51  ;;  %v1462_v33 = vadd.f32 %v1442_v62, %v2551_v29  ;;  %v1327_v50 = vsub.f32 %v988_v15, %v1742_v31  ;;  %v999_v32 = vpop.f32.mrf.mxu1  ;;  %v1880_v29 = vld [vmem:[%s2104_s15 + $0xc8] sm:$0xff]  ;;  %v1329_v52 = vsub.f32 %v1101_v28, %v1744_v63  ;;  %v2716_v51 = vpop.permute.xlu1 %864 }
 0x217   : > { %v1384_v58 = vsub.f32 %v2556_v24, %v1364_v12  ;;  %v1464_v10 = vadd.f32 %v1444_v0, %v2562_v35  ;;  %v1363_v27 = vmul.f32 %v1323_v4, %v2148_v56  ;;  %v1443_v59 = vmul.f32 %v1323_v4, %v2212_v8 }
 0x218   : > { %1402 = vst [vmem:[%s2678_s6] sm:$0xff] %v1382_v47  ;;  %1482 = vst [vmem:[%s2678_s6 + $0xa0] sm:$0xff] %v1462_v33  ;;  %v1365_v11 = vmul.f32 %v1325_v55, %v2151_v57  ;;  %v1445_v34 = vmul.f32 %v1325_v55, %v2215_v9  ;;  %v1367_v24 = vmul.f32 %v1880_v29, %v1327_v50  ;;  %v2686_v56 = vpop.f32.mrf.mxu1  ;;  %v1108_v9 = vpop.f32.mrf.mxu0 }
 0x219   : > { %v1447_v35 = vmul.f32 %v1327_v50, %v2204_v6  ;;  %1404 = vst [vmem:[%s2678_s6 + $0x10] sm:$0xff] %v1384_v58  ;;  %1484 = vst [vmem:[%s2678_s6 + $0xb0] sm:$0xff] %v1464_v10  ;;  %v1383_v8 = vsub.f32 %v2565_v22, %v1363_v27  ;;  %v1463_v2 = vadd.f32 %v1443_v59, %v2568_v61  ;;  %v2699_v22 = vpop.permute.xlu0 %859  ;;  %v1881_v61 = vld [vmem:[%s2104_s15 + $0xd8] sm:$0xff]  ;;  %v1883_v50 = vld [vmem:[%s2104_s15 + $0x30] sm:$0xff] }
 0x21a   : > { %v990_v57 = vadd.f32 %v989_v45, %v2646_v26  ;;  %v1385_v25 = vsub.f32 %v2571_v23, %v1365_v11  ;;  %v1465_v6 = vadd.f32 %v1445_v34, %v2577_v20  ;;  %v1387_v44 = vsub.f32 %v2580_v21, %v1367_v24  ;;  %v2697_v46 = vpop.f32.mrf.mxu1  ;;  %v1112_v10 = vpop.f32.mrf.mxu0 }
 0x21b   : > { %v1467_v15 = vadd.f32 %v1447_v35, %v2583_v39  ;;  %1403 = vst [vmem:[%s2678_s6 + $0x8] sm:$0xff] %v1383_v8  ;;  %1483 = vst [vmem:[%s2678_s6 + $0xa8] sm:$0xff] %v1463_v2  ;;  %v1369_v63 = vmul.f32 %v1881_v61, %v1329_v52  ;;  %v1449_v45 = vmul.f32 %v1329_v52, %v2207_v7  ;;  %v1884_v35 = vld [vmem:[%s2104_s15 + $0xe0] sm:$0xff] }
 0x21c   : > { %v1743_v28 = vclamps-f32 %v990_v57, 0.01  ;;  %v1103_v23 = vadd.f32 %v1102_v3, %v2646_v26  ;;  %1405 = vst [vmem:[%s2678_s6 + $0x18] sm:$0xff] %v1385_v25  ;;  %1485 = vst [vmem:[%s2678_s6 + $0xb8] sm:$0xff] %v1465_v6  ;;  %v994_v20 = vadd.f32 %v993_v42, %v2699_v22  ;;  %v1107_v21 = vadd.f32 %v1106_v16, %v2699_v22  ;;  %v2714_v7 = vpop.f32.mrf.mxu1  ;;  %v1885_v2 = vld [vmem:[%s2104_s15 + $0x40] sm:$0xff]  ;;  %v1887_v25 = vld [vmem:[%s2104_s15 + $0x50] sm:$0xff] }
 0x21d   : > { %1407 = vst [vmem:[%s2678_s6 + $0x28] sm:$0xff] %v1387_v44  ;;  %1487 = vst [vmem:[%s2678_s6 + $0xc8] sm:$0xff] %v1467_v15  ;;  %v996_v39 = vadd.f32 %v995_v17, %v2699_v22  ;;  %v1109_v31 = vadd.f32 %v1108_v9, %v2699_v22  ;;  %v1389_v3 = vsub.f32 %v2586_v18, %v1369_v63  ;;  %v1882_v17 = vld [vmem:[%s2104_s15 + $0xd0] sm:$0xff]  ;;  %v1888_v44 = vld [vmem:[%s2104_s15 + $0x100] sm:$0xff] }
 0x21e   : > { %v1469_v62 = vadd.f32 %v1449_v45, %v2593_v54  ;;  %v1328_v12 = vsub.f32 %v990_v57, %v1743_v28  ;;  %v1745_v0 = vclamps-f32 %v1103_v23, 0.01  ;;  %v1747_v42 = vclamps-f32 %v994_v20, 0.01  ;;  %v2721_v47 = vpop.f32.mrf.mxu1  ;;  %v1886_v57 = vld [vmem:[%s2104_s15 + $0xf0] sm:$0xff]  ;;  %v1889_v61 = vld [vmem:[%s2104_s15 + $0x60] sm:$0xff] }
 0x21f   : > { %v1749_v4 = vclamps-f32 %v1107_v21, 0.01  ;;  %v1748_v55 = vclamps-f32 %v996_v39, 0.01  ;;  %v1000_v16 = vadd.f32 %v999_v32, %v2716_v51  ;;  %1409 = vst [vmem:[%s2678_s6 + $0x38] sm:$0xff] %v1389_v3  ;;  %v1890_v28 = vld [vmem:[%s2104_s15 + $0xf8] sm:$0xff] }
 0x220   : > { %1489 = vst [vmem:[%s2678_s6 + $0xd8] sm:$0xff] %v1469_v62  ;;  %v1368_v33 = vmul.f32 %v1882_v17, %v1328_v12  ;;  %v1448_v18 = vmul.f32 %v1883_v50, %v1328_v12  ;;  %v1330_v58 = vsub.f32 %v1103_v23, %v1745_v0  ;;  %v1750_v54 = vclamps-f32 %v1109_v31, 0.01  ;;  %v2727_v34 = vpop.f32.mrf.mxu1  ;;  %v1894_v17 = vld [vmem:[%s2104_s15 + $0x118] sm:$0xff] }
 0x221   : > { %v1332_v27 = vsub.f32 %v994_v20, %v1747_v42  ;;  %v1334_v59 = vsub.f32 %v1107_v21, %v1749_v4  ;;  %v1333_v32 = vsub.f32 %v996_v39, %v1748_v55  ;;  %v1752_v11 = vclamps-f32 %v1000_v16, 0.01  ;;  %v1891_v20 = vld [vmem:[%s2104_s15 + $0x58] sm:$0xff]  ;;  %v1114_v39 = vpop.f32.mrf.mxu0  ;;  %v1893_v55 = vld [vmem:[%s2104_s15 + $0x68] sm:$0xff] }
 0x222   : > { %v1388_v29 = vsub.f32 %v2596_v60, %v1368_v33  ;;  %v1468_v24 = vadd.f32 %v1448_v18, %v2599_v13  ;;  %v1370_v8 = vmul.f32 %v1884_v35, %v1330_v58  ;;  %v1450_v52 = vmul.f32 %v1885_v2, %v1330_v58  ;;  %v2737_v60 = vpop.f32.mrf.mxu1  ;;  %v1895_v50 = vld [vmem:[%s2104_s15 + $0x78] sm:$0xff] }
 0x223   : > { %v1372_v9 = vmul.f32 %v1886_v57, %v1332_v27  ;;  %v1452_v6 = vmul.f32 %v1887_v25, %v1332_v27  ;;  %v1374_v15 = vmul.f32 %v1888_v44, %v1334_v59  ;;  %v1454_v63 = vmul.f32 %v1889_v61, %v1334_v59  ;;  %v3001_v59 = vld [vmem:[#allocation12_spill] sm:$0xff]  ;;  %v1896_v57 = vld [vmem:[%s2104_s15 + $0x130] sm:$0xff]  ;;  %v1897_v44 = vld [vmem:[%s2104_s15 + $0x128] sm:$0xff] }
 0x224   : > { %1408 = vst [vmem:[%s2678_s6 + $0x30] sm:$0xff] %v1388_v29  ;;  %1488 = vst [vmem:[%s2678_s6 + $0xd0] sm:$0xff] %v1468_v24  ;;  %v1390_v13 = vsub.f32 %v2602_v43, %v1370_v8  ;;  %v1470_v45 = vadd.f32 %v1450_v52, %v2605_v48  ;;  %v1373_v23 = vmul.f32 %v1890_v28, %v1333_v32  ;;  %v3004_v25 = vld [vmem:[#allocation22_spill] sm:$0xff]  ;;  %v1898_v61 = vld [vmem:[%s2104_s15 + $0x88] sm:$0xff] }
 0x225   : > { %v1453_v21 = vmul.f32 %v1891_v20, %v1333_v32  ;;  %v1392_v3 = vsub.f32 %v2612_v36, %v1372_v9  ;;  %v1472_v62 = vadd.f32 %v1452_v6, %v2615_v40  ;;  %v1394_v12 = vsub.f32 %v2608_v41, %v1374_v15  ;;  %v1901_v20 = vld [vmem:[%s2104_s15 + $0x90] sm:$0xff] }
 0x226   : > { %v1474_v0 = vadd.f32 %v1454_v63, %v2618_v38  ;;  %1410 = vst [vmem:[%s2678_s6 + $0x40] sm:$0xff] %v1390_v13  ;;  %1490 = vst [vmem:[%s2678_s6 + $0xe0] sm:$0xff] %v1470_v45  ;;  %v1393_v43 = vsub.f32 %v2621_v19, %v1373_v23  ;;  %v1335_v42 = vsub.f32 %v1109_v31, %v1750_v54  ;;  %v2763_v19 = vpop.f32.mrf.mxu1  ;;  %v1899_v13 = vld [vmem:[%s2104_s15 + $0x120] sm:$0xff] }
 0x227   : > { %v1473_v48 = vadd.f32 %v1453_v21, %v2626_v37  ;;  %v1337_v4 = vsub.f32 %v1000_v16, %v1752_v11  ;;  %1412 = vst [vmem:[%s2678_s6 + $0x50] sm:$0xff] %v1392_v3  ;;  %1492 = vst [vmem:[%s2678_s6 + $0xf0] sm:$0xff] %v1472_v62  ;;  %v1113_v41 = vadd.f32 %v1112_v10, %v2716_v51  ;;  %v1892_v37 = vld [vmem:[%s2104_s15 + $0x108] sm:$0xff]  ;;  %v3002_v11 = vld [vmem:[#allocation20_spill] sm:$0xff] }
 0x228   : > { %1414 = vst [vmem:[%s2678_s6 + $0x60] sm:$0xff] %v1394_v12  ;;  %1494 = vst [vmem:[%s2678_s6 + $0x100] sm:$0xff] %v1474_v0  ;;  %v1002_v36 = vadd.f32 %v2686_v56, %v2716_v51  ;;  %v1115_v40 = vadd.f32 %v1114_v39, %v2716_v51  ;;  %v1189_v38 = vadd.f32 %v2697_v46, %v2543_v14  ;;  %v3000_v10 = vld [vmem:[#allocation21_spill] sm:$0xff]  ;;  %v1849_v52 = vpop.f32.mrf.mxu1 }
 0x229   : > { %1413 = vst [vmem:[%s2678_s6 + $0x58] sm:$0xff] %v1393_v43  ;;  %1493 = vst [vmem:[%s2678_s6 + $0xf8] sm:$0xff] %v1473_v48  ;;  %v1375_v31 = vmul.f32 %v1892_v37, %v1335_v42  ;;  %v1455_v16 = vmul.f32 %v1893_v55, %v1335_v42  ;;  %v1377_v33 = vmul.f32 %v1894_v17, %v1337_v4  ;;  %v1754_v56 = vclamps-f32 %v1113_v41, 0.01  ;;  %v3006_v62 = vld [vmem:[#allocation9_spill] sm:$0xff]  ;;  %v3007_v42 = vld [vmem:[#allocation10_spill] sm:$0xff] }
 0x22a   : > { %v1457_v18 = vmul.f32 %v1895_v50, %v1337_v4  ;;  %v1753_v58 = vclamps-f32 %v1002_v36, 0.01  ;;  %v1755_v54 = vclamps-f32 %v1115_v40, 0.01  ;;  %v1184_v14 = vadd.f32 %v2714_v7, %v2537_v5  ;;  %v3003_v7 = vld [vmem:[#allocation23_spill] sm:$0xff]  ;;  %v1213_v48 = vpop.f32.mrf.mxu1 }
 0x22b   : > { %v1395_v46 = vsub.f32 %v2629_v49, %v1375_v31  ;;  %v1475_v27 = vadd.f32 %v1455_v16, %v3000_v10  ;;  %v1397_v32 = vsub.f32 %v3001_v59, %v1377_v33  ;;  %v1339_v24 = vsub.f32 %v1113_v41, %v1754_v56  ;;  %v1902_v31 = vld [vmem:[%s2104_s15 + $0x48] sm:$0xff]  ;;  %v1906_v10 = vld [vmem:[%s2104_s15 + $0x98] sm:$0xff] }
 0x22c   : > { %v1477_v29 = vadd.f32 %v1457_v18, %v3002_v11  ;;  %v1338_v35 = vsub.f32 %v1002_v36, %v1753_v58  ;;  %v1340_v8 = vsub.f32 %v1115_v40, %v1755_v54  ;;  %v1726_v2 = vclamps-f32 %v1189_v38, 0.01  ;;  %v1903_v58 = vld [vmem:[%s2104_s15 + $0xe8] sm:$0xff] }
 0x22d   : > { %v1440_v5 = vmul.f32 %v1896_v57, %v2657_v30  ;;  %1415 = vst [vmem:[%s2678_s6 + $0x68] sm:$0xff] %v1395_v46  ;;  %1495 = vst [vmem:[%s2678_s6 + $0x108] sm:$0xff] %v1475_v27  ;;  %v1721_v49 = vclamps-f32 %v1184_v14, 0.01  ;;  %v1199_v9 = vadd.f32 %v2721_v47, %v3003_v7  ;;  %v1194_v6 = vadd.f32 %v2727_v34, %v3004_v25  ;;  %v1900_v30 = vld [vmem:[%s2104_s15 + $0x80] sm:$0xff]  ;;  %v3005_v34 = vld [vmem:[#allocation19_spill] sm:$0xff] }
 0x22e   : > { %1417 = vst [vmem:[%s2678_s6 + $0x78] sm:$0xff] %v1397_v32  ;;  %1497 = vst [vmem:[%s2678_s6 + $0x118] sm:$0xff] %v1477_v29  ;;  %v1379_v15 = vmul.f32 %v1897_v44, %v1339_v24  ;;  %v1459_v63 = vmul.f32 %v1898_v61, %v1339_v24  ;;  %v1378_v45 = vmul.f32 %v1899_v13, %v1338_v35  ;;  %v1905_v46 = vld [vmem:[%s2104_s15 + $0xc0] sm:$0xff]  ;;  %v1907_v29 = vld [vmem:[%s2104_s15 + $0x138] sm:$0xff] }
 0x22f   : > { %v1458_v28 = vmul.f32 %v1900_v30, %v1338_v35  ;;  %v1380_v23 = vmul.f32 %v1896_v57, %v1340_v8  ;;  %v1460_v21 = vmul.f32 %v1901_v20, %v1340_v8  ;;  %v1311_v39 = vsub.f32 %v1189_v38, %v1726_v2  ;;  %v1908_v35 = vld [vmem:[%s2104_s15 + $0x70] sm:$0xff]  ;;  %v1526_v20 = vld [vmem:[%s2678_s6 + $0x8] sm:$0xff] (%p1996_p5) }
 0x230   : > { %v1209_v47 = vadd.f32 %v2737_v60, %v2646_v26  ;;  %v1399_v3 = vsub.f32 %v3005_v34, %v1379_v15  ;;  %v1479_v12 = vadd.f32 %v1459_v63, %v3006_v62  ;;  %v1398_v0 = vsub.f32 %v2655_v1, %v1378_v45  ;;  %v3008_v1 = vld [vmem:[#allocation11_spill] sm:$0xff]  ;;  %v1909_v2 = vld [vmem:[%s2104_s15 + $0x110] sm:$0xff]  ;;  %v1534_v34 = vld [vmem:[%s2678_s6 + $0x28] sm:$0xff] (%p1996_p5) }
 0x231   : > { %v1478_v43 = vadd.f32 %v1458_v28, %v2661_v53  ;;  %v1400_v4 = vsub.f32 %v3007_v42, %v1380_v23  ;;  %v1480_v41 = vadd.f32 %v1460_v21, %v1440_v5  ;;  %v1306_v36 = vsub.f32 %v1184_v14, %v1721_v49  ;;  %v1904_v14 = vld [vmem:[%s2104_s15 + $0x20] sm:$0xff]  ;;  %v1528_v21 = vld [vmem:[%s2678_s6 + $0x10] sm:$0xff] (%p1996_p5)  ;;  %s2838_s15 = scalar_lea.vmem (%p1996_p5), %s2929_s5, %s1761_s10  ;;  %v1538_v62 = vld [vmem:[%s2678_s6 + $0x38] sm:$0xff] (%p1996_p5) }
 0x232   : > { %1419 = vst [vmem:[%s2678_s6 + $0x88] sm:$0xff] %v1399_v3  ;;  %1499 = vst [vmem:[%s2678_s6 + $0x128] sm:$0xff] %v1479_v12  ;;  %v1736_v26 = vclamps-f32 %v1199_v9, 0.01  ;;  %v1731_v60 = vclamps-f32 %v1194_v6, 0.01  ;;  %v1204_v53 = vadd.f32 %v2763_v19, %v3008_v1  ;;  %v1219_v38 = vadd.f32 %v1849_v52, %v2716_v51 }
 0x233   : > { %1418 = vst [vmem:[%s2678_s6 + $0x80] sm:$0xff] %v1398_v0  ;;  %1498 = vst [vmem:[%s2678_s6 + $0x120] sm:$0xff] %v1478_v43  ;;  %v1746_v40 = vclamps-f32 %v1209_v47, 0.01  ;;  %v1214_v37 = vadd.f32 %v1213_v48, %v2699_v22  ;;  %v1351_v55 = vmul.f32 %v1902_v31, %v1311_v39  ;;  %v1431_v54 = vmul.f32 %v1903_v58, %v1311_v39  ;;  %v1524_v23 = vld [vmem:[%s2678_s6] sm:$0xff] (%p1996_p5)  ;;  %v1530_v39 = vld [vmem:[%s2678_s6 + $0x18] sm:$0xff] (%p1996_p5) }
 0x234   : > { %1420 = vst [vmem:[%s2678_s6 + $0x90] sm:$0xff] %v1400_v4  ;;  %1500 = vst [vmem:[%s2678_s6 + $0x130] sm:$0xff] %v1480_v41  ;;  %v1321_v16 = vsub.f32 %v1199_v9, %v1736_v26  ;;  %v1316_v17 = vsub.f32 %v1194_v6, %v1731_v60  ;;  %v1741_v50 = vclamps-f32 %v1204_v53, 0.01  ;;  %v1756_v18 = vclamps-f32 %v1219_v38, 0.01 }
 0x235   : > { %v1331_v33 = vsub.f32 %v1209_v47, %v1746_v40  ;;  %v1751_v56 = vclamps-f32 %v1214_v37, 0.01  ;;  %v1346_v19 = vmul.f32 %v1904_v14, %v1306_v36  ;;  %v1426_v51 = vmul.f32 %v1905_v46, %v1306_v36  ;;  %v1536_v3 = vld [vmem:[%s2678_s6 + $0x30] sm:$0xff] (%p1996_p5)  ;;  %v1540_v12 = vld [vmem:[%s2678_s6 + $0x40] sm:$0xff] (%p1996_p5)  ;;  %1525 = vst [vmem:[%s2838_s15] sm:$0xff] (%p1996_p5), %v1524_v23  ;;  %1527 = vst [vmem:[%s2838_s15 + $0x8] sm:$0xff] (%p1996_p5), %v1526_v20 }
 0x236   : > { %v1361_v27 = vmul.f32 %v1906_v10, %v1321_v16  ;;  %v1326_v32 = vsub.f32 %v1204_v53, %v1741_v50  ;;  %v1341_v11 = vsub.f32 %v1219_v38, %v1756_v18  ;;  %v1441_v24 = vmul.f32 %v1907_v29, %v1321_v16  ;;  %1529 = vst [vmem:[%s2838_s15 + $0x10] sm:$0xff] (%p1996_p5), %v1528_v21  ;;  %v1544_v43 = vld [vmem:[%s2678_s6 + $0x50] sm:$0xff] (%p1996_p5)  ;;  %v1546_v48 = vld [vmem:[%s2678_s6 + $0x58] sm:$0xff] (%p1996_p5)  ;;  %v1548_v42 = vld [vmem:[%s2678_s6 + $0x60] sm:$0xff] (%p1996_p5) }
 0x237   : > { %v1371_v22 = vmul.f32 %v1903_v58, %v1331_v33  ;;  %v1451_v59 = vmul.f32 %v1902_v31, %v1331_v33  ;;  %v1356_v8 = vmul.f32 %v1908_v35, %v1316_v17  ;;  %v1436_v52 = vmul.f32 %v1909_v2, %v1316_v17  ;;  %1531 = vst [vmem:[%s2838_s15 + $0x18] sm:$0xff] (%p1996_p5), %v1530_v39  ;;  %v1550_v4 = vld [vmem:[%s2678_s6 + $0x68] sm:$0xff] (%p1996_p5)  ;;  %v1554_v36 = vld [vmem:[%s2678_s6 + $0x78] sm:$0xff] (%p1996_p5)  ;;  %v1564_v53 = vld [vmem:[%s2678_s6 + $0xa0] sm:$0xff] (%p1996_p5) }
 0x238   : > { %v1336_v57 = vsub.f32 %v1214_v37, %v1751_v56  ;;  %v1366_v7 = vmul.f32 %v1905_v46, %v1326_v32  ;;  %v1446_v9 = vmul.f32 %v1904_v14, %v1326_v32  ;;  %v1381_v25 = vmul.f32 %v1907_v29, %v1341_v11  ;;  %1535 = vst [vmem:[%s2838_s15 + $0x50] sm:$0xff] (%p1996_p5), %v1534_v34  ;;  %v1566_v38 = vld [vmem:[%s2678_s6 + $0xa8] sm:$0xff] (%p1996_p5)  ;;  %v1568_v37 = vld [vmem:[%s2678_s6 + $0xb0] sm:$0xff] (%p1996_p5)  ;;  %v1570_v31 = vld [vmem:[%s2678_s6 + $0xb8] sm:$0xff] (%p1996_p5) }
 0x239   : > { %v1391_v5 = vsub.f32 %v1351_v55, %v1371_v22  ;;  %v1471_v49 = vadd.f32 %v1451_v59, %v1431_v54  ;;  %v1461_v6 = vmul.f32 %v1906_v10, %v1341_v11  ;;  %1537 = vst [vmem:[%s2838_s15 + $0x58] sm:$0xff] (%p1996_p5), %v1536_v3  ;;  %1539 = vst [vmem:[%s2838_s15 + $0x60] sm:$0xff] (%p1996_p5), %v1538_v62  ;;  %v1558_v60 = vld [vmem:[%s2678_s6 + $0x88] sm:$0xff] (%p1996_p5)  ;;  %v1576_v17 = vld [vmem:[%s2678_s6 + $0xd0] sm:$0xff] (%p1996_p5) }
 0x23a   : > { %v1376_v44 = vmul.f32 %v1909_v2, %v1336_v57  ;;  %v1456_v15 = vmul.f32 %v1908_v35, %v1336_v57  ;;  %v1386_v61 = vsub.f32 %v1346_v19, %v1366_v7  ;;  %v1466_v63 = vadd.f32 %v1446_v9, %v1426_v51  ;;  %1508 = sbr.rel (!%p1996_p5) target bundleno = 591 (0x24f), region = 67  ;;  %1541 = vst [vmem:[%s2838_s15 + $0x68] sm:$0xff] (%p1996_p5), %v1540_v12  ;;  %v1556_v26 = vld [vmem:[%s2678_s6 + $0x80] sm:$0xff] (%p1996_p5)  ;;  %v1574_v16 = vld [vmem:[%s2678_s6 + $0xc8] sm:$0xff] (%p1996_p5)  ;;  %v1578_v33 = vld [vmem:[%s2678_s6 + $0xd8] sm:$0xff] (%p1996_p5) }
 0x23b   : > { %1411 = vst [vmem:[%s2678_s6 + $0x48] sm:$0xff] %v1391_v5  ;;  %1491 = vst [vmem:[%s2678_s6 + $0xe8] sm:$0xff] %v1471_v49  ;;  %v1401_v13 = vsub.f32 %v1361_v27, %v1381_v25  ;;  %v1481_v45 = vadd.f32 %v1461_v6, %v1441_v24  ;;  %v1560_v40 = vld [vmem:[%s2678_s6 + $0x90] sm:$0xff] (%p1996_p5)  ;;  %v1580_v50 = vld [vmem:[%s2678_s6 + $0xe0] sm:$0xff] (%p1996_p5) }
 0x23c   : > { %v1396_v30 = vsub.f32 %v1356_v8, %v1376_v44  ;;  %v1476_v28 = vadd.f32 %v1456_v15, %v1436_v52  ;;  %1406 = vst [vmem:[%s2678_s6 + $0x20] sm:$0xff] %v1386_v61  ;;  %1486 = vst [vmem:[%s2678_s6 + $0xc0] sm:$0xff] %v1466_v63  ;;  %v1584_v56 = vld [vmem:[%s2678_s6 + $0xf0] sm:$0xff] (%p1996_p5)  ;;  %v1586_v58 = vld [vmem:[%s2678_s6 + $0xf8] sm:$0xff] (%p1996_p5) }
 0x23d   : > { %1421 = vst [vmem:[%s2678_s6 + $0x98] sm:$0xff] %v1401_v13  ;;  %1501 = vst [vmem:[%s2678_s6 + $0x138] sm:$0xff] %v1481_v45  ;;  %v1588_v54 = vld [vmem:[%s2678_s6 + $0x100] sm:$0xff] (%p1996_p5)  ;;  %v1590_v14 = vld [vmem:[%s2678_s6 + $0x108] sm:$0xff] (%p1996_p5) }
 0x23e   : > { %1416 = vst [vmem:[%s2678_s6 + $0x70] sm:$0xff] %v1396_v30  ;;  %1496 = vst [vmem:[%s2678_s6 + $0x110] sm:$0xff] %v1476_v28  ;;  %v1594_v46 = vld [vmem:[%s2678_s6 + $0x118] sm:$0xff] (%p1996_p5)  ;;  %v1596_v51 = vld [vmem:[%s2678_s6 + $0x120] sm:$0xff] (%p1996_p5) }
 0x23f   : > { %1545 = vst [vmem:[%s2838_s15 + $0xa0] sm:$0xff] %v1544_v43  ;;  %1547 = vst [vmem:[%s2838_s15 + $0xa8] sm:$0xff] %v1546_v48  ;;  %v1598_v10 = vld [vmem:[%s2678_s6 + $0x128] sm:$0xff]  ;;  %v1600_v27 = vld [vmem:[%s2678_s6 + $0x130] sm:$0xff] }
 0x240   : > { %1549 = vst [vmem:[%s2838_s15 + $0xb0] sm:$0xff] %v1548_v42  ;;  %1551 = vst [vmem:[%s2838_s15 + $0xb8] sm:$0xff] %v1550_v4 }
 0x241   : > { %1555 = vst [vmem:[%s2838_s15 + $0xf0] sm:$0xff] %v1554_v36  ;;  %1557 = vst [vmem:[%s2838_s15 + $0xf8] sm:$0xff] %v1556_v26 }
 0x242   : > { %v1542_v0 = vld [vmem:[%s2678_s6 + $0x48] sm:$0xff]  ;;  %1559 = vst [vmem:[%s2838_s15 + $0x100] sm:$0xff] %v1558_v60  ;;  %1561 = vst [vmem:[%s2838_s15 + $0x108] sm:$0xff] %v1560_v40 }
 0x243   : > { %v1532_v47 = vld [vmem:[%s2678_s6 + $0x20] sm:$0xff]  ;;  %1543 = vst [vmem:[%s2838_s15 + $0x70] sm:$0xff] %v1542_v0  ;;  %1565 = vst [vmem:[%s2838_s15 + $0x140] sm:$0xff] %v1564_v53  ;;  %v1582_v18 = vld [vmem:[%s2678_s6 + $0xe8] sm:$0xff] }
 0x244   : > { %1533 = vst [vmem:[%s2838_s15 + $0x20] sm:$0xff] %v1532_v47  ;;  %v1562_v1 = vld [vmem:[%s2678_s6 + $0x98] sm:$0xff]  ;;  %1567 = vst [vmem:[%s2838_s15 + $0x148] sm:$0xff] %v1566_v38  ;;  %v1572_v55 = vld [vmem:[%s2678_s6 + $0xc0] sm:$0xff] }
 0x245   : > { %v1552_v41 = vld [vmem:[%s2678_s6 + $0x70] sm:$0xff]  ;;  %1563 = vst [vmem:[%s2838_s15 + $0x110] sm:$0xff] %v1562_v1  ;;  %1569 = vst [vmem:[%s2838_s15 + $0x150] sm:$0xff] %v1568_v37  ;;  %v1602_v22 = vld [vmem:[%s2678_s6 + $0x138] sm:$0xff] }
 0x246   : > { %1553 = vst [vmem:[%s2838_s15 + $0xc0] sm:$0xff] %v1552_v41  ;;  %1571 = vst [vmem:[%s2838_s15 + $0x158] sm:$0xff] %v1570_v31  ;;  %v1592_v19 = vld [vmem:[%s2678_s6 + $0x110] sm:$0xff] }
 0x247   : > { %1573 = vst [vmem:[%s2838_s15 + $0x160] sm:$0xff] %v1572_v55  ;;  %1575 = vst [vmem:[%s2838_s15 + $0x190] sm:$0xff] %v1574_v16 }
 0x248   : > { %1577 = vst [vmem:[%s2838_s15 + $0x198] sm:$0xff] %v1576_v17  ;;  %1579 = vst [vmem:[%s2838_s15 + $0x1a0] sm:$0xff] %v1578_v33 }
 0x249   : > { %1581 = vst [vmem:[%s2838_s15 + $0x1a8] sm:$0xff] %v1580_v50  ;;  %1583 = vst [vmem:[%s2838_s15 + $0x1b0] sm:$0xff] %v1582_v18 }
 0x24a   : > { %1585 = vst [vmem:[%s2838_s15 + $0x1e0] sm:$0xff] %v1584_v56  ;;  %1587 = vst [vmem:[%s2838_s15 + $0x1e8] sm:$0xff] %v1586_v58 }
 0x24b   : > { %1589 = vst [vmem:[%s2838_s15 + $0x1f0] sm:$0xff] %v1588_v54  ;;  %1591 = vst [vmem:[%s2838_s15 + $0x1f8] sm:$0xff] %v1590_v14 }
 0x24c   : > { %1593 = vst [vmem:[%s2838_s15 + $0x200] sm:$0xff] %v1592_v19  ;;  %1595 = vst [vmem:[%s2838_s15 + $0x230] sm:$0xff] %v1594_v46 }
 0x24d   : > { %1597 = vst [vmem:[%s2838_s15 + $0x238] sm:$0xff] %v1596_v51  ;;  %1599 = vst [vmem:[%s2838_s15 + $0x240] sm:$0xff] %v1598_v10 }
 0x24e   : > { %1601 = vst [vmem:[%s2838_s15 + $0x248] sm:$0xff] %v1600_v27  ;;  %1603 = vst [vmem:[%s2838_s15 + $0x250] sm:$0xff] %v1602_v22 }
 0x24f PF: > { %p12_p10 = scmp.ge.s32.totalorder %s1983_s22, 4   ;;  %s3009_s18 = smov %s1928_s19 }
 0x250   : > { %s3010_s19 = smov %s1994_s25  ;;  %s3011_s20 = smov %s1983_s22 }
 0x251   :  { %14 = sbr.rel (!%p12_p10) target bundleno = 2 (0x2), region = 121 }

// kernel: reverse.1
= control target key start
LH: loop header
LB: loop body
LE: loop exit
PB: predicated region body
PF: predicated region fallthrough
CT: control target
= control target key end

     0   :  { %s1352_s0 = inlined_call_operand.vmem [shape: f32[32,8,16,7], index: 0, kind: input, shape index: {}]   ;;  %s1353_s1 = inlined_call_operand.vmem [shape: f32[32,8,16,7], index: 1, kind: output, shape index: {}]  }
   0x1   :  { %v448_v0 = vld [vmem:[%s1352_s0 + $0x60] sm:$0xff]  ;;  %v449_v1 = vld [vmem:[%s1352_s0 + $0xd0] sm:$0xff]  ;;  %v558_v56 = vld [vmem:[%s1352_s0 + $0x68] sm:$0xff] }
   0x2   :  { %v451_v2 = vld [vmem:[%s1352_s0 + $0x140] sm:$0xff]  ;;  %4 = vst [vmem:[%s1353_s1] sm:$0xff] %v448_v0  ;;  %450 = vst [vmem:[%s1353_s1 + $0x70] sm:$0xff] %v449_v1  ;;  %v453_v3 = vld [vmem:[%s1352_s0 + $0x1b0] sm:$0xff] }
   0x3   :  { %452 = vst [vmem:[%s1353_s1 + $0xe0] sm:$0xff] %v451_v2  ;;  %v455_v4 = vld [vmem:[%s1352_s0 + $0x220] sm:$0xff]  ;;  %v457_v5 = vld [vmem:[%s1352_s0 + $0x290] sm:$0xff]  ;;  %454 = vst [vmem:[%s1353_s1 + $0x150] sm:$0xff] %v453_v3 }
   0x4   :  { %456 = vst [vmem:[%s1353_s1 + $0x1c0] sm:$0xff] %v455_v4  ;;  %458 = vst [vmem:[%s1353_s1 + $0x230] sm:$0xff] %v457_v5  ;;  %v459_v6 = vld [vmem:[%s1352_s0 + $0x300] sm:$0xff]  ;;  %v461_v7 = vld [vmem:[%s1352_s0 + $0x370] sm:$0xff] }
   0x5   :  { %v463_v8 = vld [vmem:[%s1352_s0 + $0x50] sm:$0xff]  ;;  %460 = vst [vmem:[%s1353_s1 + $0x2a0] sm:$0xff] %v459_v6  ;;  %462 = vst [vmem:[%s1353_s1 + $0x310] sm:$0xff] %v461_v7  ;;  %v465_v9 = vld [vmem:[%s1352_s0 + $0xc0] sm:$0xff] }
   0x6   :  { %464 = vst [vmem:[%s1353_s1 + $0x10] sm:$0xff] %v463_v8  ;;  %v467_v10 = vld [vmem:[%s1352_s0 + $0x130] sm:$0xff]  ;;  %v469_v11 = vld [vmem:[%s1352_s0 + $0x1a0] sm:$0xff]  ;;  %466 = vst [vmem:[%s1353_s1 + $0x80] sm:$0xff] %v465_v9 }
   0x7   :  { %468 = vst [vmem:[%s1353_s1 + $0xf0] sm:$0xff] %v467_v10  ;;  %470 = vst [vmem:[%s1353_s1 + $0x160] sm:$0xff] %v469_v11  ;;  %v471_v12 = vld [vmem:[%s1352_s0 + $0x210] sm:$0xff]  ;;  %v473_v13 = vld [vmem:[%s1352_s0 + $0x280] sm:$0xff] }
   0x8   :  { %v475_v14 = vld [vmem:[%s1352_s0 + $0x2f0] sm:$0xff]  ;;  %472 = vst [vmem:[%s1353_s1 + $0x1d0] sm:$0xff] %v471_v12  ;;  %474 = vst [vmem:[%s1353_s1 + $0x240] sm:$0xff] %v473_v13  ;;  %v477_v15 = vld [vmem:[%s1352_s0 + $0x360] sm:$0xff] }
   0x9   :  { %476 = vst [vmem:[%s1353_s1 + $0x2b0] sm:$0xff] %v475_v14  ;;  %v479_v16 = vld [vmem:[%s1352_s0 + $0x40] sm:$0xff]  ;;  %v481_v17 = vld [vmem:[%s1352_s0 + $0xb0] sm:$0xff]  ;;  %478 = vst [vmem:[%s1353_s1 + $0x320] sm:$0xff] %v477_v15 }
   0xa   :  { %480 = vst [vmem:[%s1353_s1 + $0x20] sm:$0xff] %v479_v16  ;;  %482 = vst [vmem:[%s1353_s1 + $0x90] sm:$0xff] %v481_v17  ;;  %v483_v18 = vld [vmem:[%s1352_s0 + $0x120] sm:$0xff]  ;;  %v485_v19 = vld [vmem:[%s1352_s0 + $0x190] sm:$0xff] }
   0xb   :  { %v487_v20 = vld [vmem:[%s1352_s0 + $0x200] sm:$0xff]  ;;  %484 = vst [vmem:[%s1353_s1 + $0x100] sm:$0xff] %v483_v18  ;;  %486 = vst [vmem:[%s1353_s1 + $0x170] sm:$0xff] %v485_v19  ;;  %v489_v21 = vld [vmem:[%s1352_s0 + $0x270] sm:$0xff] }
   0xc   :  { %488 = vst [vmem:[%s1353_s1 + $0x1e0] sm:$0xff] %v487_v20  ;;  %v491_v22 = vld [vmem:[%s1352_s0 + $0x2e0] sm:$0xff]  ;;  %v493_v23 = vld [vmem:[%s1352_s0 + $0x350] sm:$0xff]  ;;  %490 = vst [vmem:[%s1353_s1 + $0x250] sm:$0xff] %v489_v21 }
   0xd   :  { %492 = vst [vmem:[%s1353_s1 + $0x2c0] sm:$0xff] %v491_v22  ;;  %494 = vst [vmem:[%s1353_s1 + $0x330] sm:$0xff] %v493_v23  ;;  %v495_v24 = vld [vmem:[%s1352_s0 + $0x30] sm:$0xff]  ;;  %v497_v25 = vld [vmem:[%s1352_s0 + $0xa0] sm:$0xff] }
   0xe   :  { %v499_v26 = vld [vmem:[%s1352_s0 + $0x110] sm:$0xff]  ;;  %496 = vst [vmem:[%s1353_s1 + $0x30] sm:$0xff] %v495_v24  ;;  %498 = vst [vmem:[%s1353_s1 + $0xa0] sm:$0xff] %v497_v25  ;;  %v501_v27 = vld [vmem:[%s1352_s0 + $0x180] sm:$0xff] }
   0xf   :  { %500 = vst [vmem:[%s1353_s1 + $0x110] sm:$0xff] %v499_v26  ;;  %v503_v28 = vld [vmem:[%s1352_s0 + $0x1f0] sm:$0xff]  ;;  %v505_v29 = vld [vmem:[%s1352_s0 + $0x260] sm:$0xff]  ;;  %502 = vst [vmem:[%s1353_s1 + $0x180] sm:$0xff] %v501_v27 }
  0x10   :  { %504 = vst [vmem:[%s1353_s1 + $0x1f0] sm:$0xff] %v503_v28  ;;  %506 = vst [vmem:[%s1353_s1 + $0x260] sm:$0xff] %v505_v29  ;;  %v507_v30 = vld [vmem:[%s1352_s0 + $0x2d0] sm:$0xff]  ;;  %v509_v31 = vld [vmem:[%s1352_s0 + $0x340] sm:$0xff] }
  0x11   :  { %v511_v32 = vld [vmem:[%s1352_s0 + $0x20] sm:$0xff]  ;;  %508 = vst [vmem:[%s1353_s1 + $0x2d0] sm:$0xff] %v507_v30  ;;  %510 = vst [vmem:[%s1353_s1 + $0x340] sm:$0xff] %v509_v31  ;;  %v513_v33 = vld [vmem:[%s1352_s0 + $0x90] sm:$0xff] }
  0x12   :  { %512 = vst [vmem:[%s1353_s1 + $0x40] sm:$0xff] %v511_v32  ;;  %v515_v34 = vld [vmem:[%s1352_s0 + $0x100] sm:$0xff]  ;;  %v517_v35 = vld [vmem:[%s1352_s0 + $0x170] sm:$0xff]  ;;  %514 = vst [vmem:[%s1353_s1 + $0xb0] sm:$0xff] %v513_v33 }
  0x13   :  { %516 = vst [vmem:[%s1353_s1 + $0x120] sm:$0xff] %v515_v34  ;;  %518 = vst [vmem:[%s1353_s1 + $0x190] sm:$0xff] %v517_v35  ;;  %v519_v36 = vld [vmem:[%s1352_s0 + $0x1e0] sm:$0xff]  ;;  %v521_v37 = vld [vmem:[%s1352_s0 + $0x250] sm:$0xff] }
  0x14   :  { %v523_v38 = vld [vmem:[%s1352_s0 + $0x2c0] sm:$0xff]  ;;  %520 = vst [vmem:[%s1353_s1 + $0x200] sm:$0xff] %v519_v36  ;;  %522 = vst [vmem:[%s1353_s1 + $0x270] sm:$0xff] %v521_v37  ;;  %v525_v39 = vld [vmem:[%s1352_s0 + $0x330] sm:$0xff] }
  0x15   :  { %524 = vst [vmem:[%s1353_s1 + $0x2e0] sm:$0xff] %v523_v38  ;;  %v527_v40 = vld [vmem:[%s1352_s0 + $0x10] sm:$0xff]  ;;  %v529_v41 = vld [vmem:[%s1352_s0 + $0x80] sm:$0xff]  ;;  %526 = vst [vmem:[%s1353_s1 + $0x350] sm:$0xff] %v525_v39 }
  0x16   :  { %528 = vst [vmem:[%s1353_s1 + $0x50] sm:$0xff] %v527_v40  ;;  %530 = vst [vmem:[%s1353_s1 + $0xc0] sm:$0xff] %v529_v41  ;;  %v531_v42 = vld [vmem:[%s1352_s0 + $0xf0] sm:$0xff]  ;;  %v533_v43 = vld [vmem:[%s1352_s0 + $0x160] sm:$0xff] }
  0x17   :  { %v535_v44 = vld [vmem:[%s1352_s0 + $0x1d0] sm:$0xff]  ;;  %532 = vst [vmem:[%s1353_s1 + $0x130] sm:$0xff] %v531_v42  ;;  %534 = vst [vmem:[%s1353_s1 + $0x1a0] sm:$0xff] %v533_v43  ;;  %v537_v45 = vld [vmem:[%s1352_s0 + $0x240] sm:$0xff] }
  0x18   :  { %536 = vst [vmem:[%s1353_s1 + $0x210] sm:$0xff] %v535_v44  ;;  %v539_v46 = vld [vmem:[%s1352_s0 + $0x2b0] sm:$0xff]  ;;  %v541_v47 = vld [vmem:[%s1352_s0 + $0x320] sm:$0xff]  ;;  %538 = vst [vmem:[%s1353_s1 + $0x280] sm:$0xff] %v537_v45 }
  0x19   :  { %540 = vst [vmem:[%s1353_s1 + $0x2f0] sm:$0xff] %v539_v46  ;;  %542 = vst [vmem:[%s1353_s1 + $0x360] sm:$0xff] %v541_v47  ;;  %v193_v48 = vld [vmem:[%s1352_s0] sm:$0xff]  ;;  %v544_v49 = vld [vmem:[%s1352_s0 + $0x70] sm:$0xff] }
  0x1a   :  { %v546_v50 = vld [vmem:[%s1352_s0 + $0xe0] sm:$0xff]  ;;  %543 = vst [vmem:[%s1353_s1 + $0x60] sm:$0xff] %v193_v48  ;;  %545 = vst [vmem:[%s1353_s1 + $0xd0] sm:$0xff] %v544_v49  ;;  %v548_v51 = vld [vmem:[%s1352_s0 + $0x150] sm:$0xff] }
  0x1b   :  { %547 = vst [vmem:[%s1353_s1 + $0x140] sm:$0xff] %v546_v50  ;;  %v550_v52 = vld [vmem:[%s1352_s0 + $0x1c0] sm:$0xff]  ;;  %v552_v53 = vld [vmem:[%s1352_s0 + $0x230] sm:$0xff]  ;;  %549 = vst [vmem:[%s1353_s1 + $0x1b0] sm:$0xff] %v548_v51 }
  0x1c   :  { %551 = vst [vmem:[%s1353_s1 + $0x220] sm:$0xff] %v550_v52  ;;  %553 = vst [vmem:[%s1353_s1 + $0x290] sm:$0xff] %v552_v53  ;;  %v554_v54 = vld [vmem:[%s1352_s0 + $0x2a0] sm:$0xff]  ;;  %v556_v55 = vld [vmem:[%s1352_s0 + $0x310] sm:$0xff] }
  0x1d   :  { %555 = vst [vmem:[%s1353_s1 + $0x300] sm:$0xff] %v554_v54  ;;  %557 = vst [vmem:[%s1353_s1 + $0x370] sm:$0xff] %v556_v55  ;;  %v560_v57 = vld [vmem:[%s1352_s0 + $0xd8] sm:$0xff]  ;;  %v562_v58 = vld [vmem:[%s1352_s0 + $0x148] sm:$0xff] }
  0x1e   :  { %559 = vst [vmem:[%s1353_s1 + $0x8] sm:$0xff] %v558_v56  ;;  %v564_v59 = vld [vmem:[%s1352_s0 + $0x1b8] sm:$0xff]  ;;  %561 = vst [vmem:[%s1353_s1 + $0x78] sm:$0xff] %v560_v57  ;;  %v566_v60 = vld [vmem:[%s1352_s0 + $0x228] sm:$0xff] }
  0x1f   :  { %563 = vst [vmem:[%s1353_s1 + $0xe8] sm:$0xff] %v562_v58  ;;  %565 = vst [vmem:[%s1353_s1 + $0x158] sm:$0xff] %v564_v59  ;;  %v568_v61 = vld [vmem:[%s1352_s0 + $0x298] sm:$0xff]  ;;  %v570_v62 = vld [vmem:[%s1352_s0 + $0x308] sm:$0xff] }
  0x20   :  { %567 = vst [vmem:[%s1353_s1 + $0x1c8] sm:$0xff] %v566_v60  ;;  %569 = vst [vmem:[%s1353_s1 + $0x238] sm:$0xff] %v568_v61  ;;  %v572_v63 = vld [vmem:[%s1352_s0 + $0x378] sm:$0xff]  ;;  %v576_v1 = vld [vmem:[%s1352_s0 + $0xc8] sm:$0xff] }
  0x21   :  { %571 = vst [vmem:[%s1353_s1 + $0x2a8] sm:$0xff] %v570_v62  ;;  %v574_v0 = vld [vmem:[%s1352_s0 + $0x58] sm:$0xff]  ;;  %573 = vst [vmem:[%s1353_s1 + $0x318] sm:$0xff] %v572_v63  ;;  %v580_v3 = vld [vmem:[%s1352_s0 + $0x1a8] sm:$0xff] }
  0x22   :  { %575 = vst [vmem:[%s1353_s1 + $0x18] sm:$0xff] %v574_v0  ;;  %577 = vst [vmem:[%s1353_s1 + $0x88] sm:$0xff] %v576_v1  ;;  %v578_v2 = vld [vmem:[%s1352_s0 + $0x138] sm:$0xff]  ;;  %v584_v5 = vld [vmem:[%s1352_s0 + $0x288] sm:$0xff] }
  0x23   :  { %v582_v4 = vld [vmem:[%s1352_s0 + $0x218] sm:$0xff]  ;;  %579 = vst [vmem:[%s1353_s1 + $0xf8] sm:$0xff] %v578_v2  ;;  %581 = vst [vmem:[%s1353_s1 + $0x168] sm:$0xff] %v580_v3  ;;  %v588_v7 = vld [vmem:[%s1352_s0 + $0x368] sm:$0xff] }
  0x24   :  { %583 = vst [vmem:[%s1353_s1 + $0x1d8] sm:$0xff] %v582_v4  ;;  %v586_v6 = vld [vmem:[%s1352_s0 + $0x2f8] sm:$0xff]  ;;  %585 = vst [vmem:[%s1353_s1 + $0x248] sm:$0xff] %v584_v5  ;;  %v590_v8 = vld [vmem:[%s1352_s0 + $0x48] sm:$0xff] }
  0x25   :  { %587 = vst [vmem:[%s1353_s1 + $0x2b8] sm:$0xff] %v586_v6  ;;  %589 = vst [vmem:[%s1353_s1 + $0x328] sm:$0xff] %v588_v7  ;;  %v592_v9 = vld [vmem:[%s1352_s0 + $0xb8] sm:$0xff]  ;;  %v594_v10 = vld [vmem:[%s1352_s0 + $0x128] sm:$0xff] }
  0x26   :  { %591 = vst [vmem:[%s1353_s1 + $0x28] sm:$0xff] %v590_v8  ;;  %593 = vst [vmem:[%s1353_s1 + $0x98] sm:$0xff] %v592_v9  ;;  %v596_v11 = vld [vmem:[%s1352_s0 + $0x198] sm:$0xff]  ;;  %v598_v12 = vld [vmem:[%s1352_s0 + $0x208] sm:$0xff] }
  0x27   :  { %595 = vst [vmem:[%s1353_s1 + $0x108] sm:$0xff] %v594_v10  ;;  %v600_v13 = vld [vmem:[%s1352_s0 + $0x278] sm:$0xff]  ;;  %597 = vst [vmem:[%s1353_s1 + $0x178] sm:$0xff] %v596_v11  ;;  %v602_v14 = vld [vmem:[%s1352_s0 + $0x2e8] sm:$0xff] }
  0x28   :  { %599 = vst [vmem:[%s1353_s1 + $0x1e8] sm:$0xff] %v598_v12  ;;  %601 = vst [vmem:[%s1353_s1 + $0x258] sm:$0xff] %v600_v13  ;;  %v604_v15 = vld [vmem:[%s1352_s0 + $0x358] sm:$0xff]  ;;  %v608_v17 = vld [vmem:[%s1352_s0 + $0xa8] sm:$0xff] }
  0x29   :  { %v606_v16 = vld [vmem:[%s1352_s0 + $0x38] sm:$0xff]  ;;  %603 = vst [vmem:[%s1353_s1 + $0x2c8] sm:$0xff] %v602_v14  ;;  %605 = vst [vmem:[%s1353_s1 + $0x338] sm:$0xff] %v604_v15  ;;  %v612_v19 = vld [vmem:[%s1352_s0 + $0x188] sm:$0xff] }
  0x2a   :  { %607 = vst [vmem:[%s1353_s1 + $0x38] sm:$0xff] %v606_v16  ;;  %v610_v18 = vld [vmem:[%s1352_s0 + $0x118] sm:$0xff]  ;;  %609 = vst [vmem:[%s1353_s1 + $0xa8] sm:$0xff] %v608_v17  ;;  %v616_v21 = vld [vmem:[%s1352_s0 + $0x268] sm:$0xff] }
  0x2b   :  { %611 = vst [vmem:[%s1353_s1 + $0x118] sm:$0xff] %v610_v18  ;;  %613 = vst [vmem:[%s1353_s1 + $0x188] sm:$0xff] %v612_v19  ;;  %v614_v20 = vld [vmem:[%s1352_s0 + $0x1f8] sm:$0xff]  ;;  %v620_v23 = vld [vmem:[%s1352_s0 + $0x348] sm:$0xff] }
  0x2c   :  { %v618_v22 = vld [vmem:[%s1352_s0 + $0x2d8] sm:$0xff]  ;;  %615 = vst [vmem:[%s1353_s1 + $0x1f8] sm:$0xff] %v614_v20  ;;  %617 = vst [vmem:[%s1353_s1 + $0x268] sm:$0xff] %v616_v21  ;;  %v622_v24 = vld [vmem:[%s1352_s0 + $0x28] sm:$0xff] }
  0x2d   :  { %619 = vst [vmem:[%s1353_s1 + $0x2d8] sm:$0xff] %v618_v22  ;;  %v624_v25 = vld [vmem:[%s1352_s0 + $0x98] sm:$0xff]  ;;  %621 = vst [vmem:[%s1353_s1 + $0x348] sm:$0xff] %v620_v23  ;;  %v626_v26 = vld [vmem:[%s1352_s0 + $0x108] sm:$0xff] }
  0x2e   :  { %623 = vst [vmem:[%s1353_s1 + $0x48] sm:$0xff] %v622_v24  ;;  %625 = vst [vmem:[%s1353_s1 + $0xb8] sm:$0xff] %v624_v25  ;;  %v628_v27 = vld [vmem:[%s1352_s0 + $0x178] sm:$0xff]  ;;  %v630_v28 = vld [vmem:[%s1352_s0 + $0x1e8] sm:$0xff] }
  0x2f   :  { %627 = vst [vmem:[%s1353_s1 + $0x128] sm:$0xff] %v626_v26  ;;  %629 = vst [vmem:[%s1353_s1 + $0x198] sm:$0xff] %v628_v27  ;;  %v632_v29 = vld [vmem:[%s1352_s0 + $0x258] sm:$0xff]  ;;  %v634_v30 = vld [vmem:[%s1352_s0 + $0x2c8] sm:$0xff] }
  0x30   :  { %631 = vst [vmem:[%s1353_s1 + $0x208] sm:$0xff] %v630_v28  ;;  %v636_v31 = vld [vmem:[%s1352_s0 + $0x338] sm:$0xff]  ;;  %633 = vst [vmem:[%s1353_s1 + $0x278] sm:$0xff] %v632_v29  ;;  %v640_v33 = vld [vmem:[%s1352_s0 + $0x88] sm:$0xff] }
  0x31   :  { %635 = vst [vmem:[%s1353_s1 + $0x2e8] sm:$0xff] %v634_v30  ;;  %637 = vst [vmem:[%s1353_s1 + $0x358] sm:$0xff] %v636_v31  ;;  %v638_v32 = vld [vmem:[%s1352_s0 + $0x18] sm:$0xff]  ;;  %v644_v35 = vld [vmem:[%s1352_s0 + $0x168] sm:$0xff] }
  0x32   :  { %v642_v34 = vld [vmem:[%s1352_s0 + $0xf8] sm:$0xff]  ;;  %639 = vst [vmem:[%s1353_s1 + $0x58] sm:$0xff] %v638_v32  ;;  %641 = vst [vmem:[%s1353_s1 + $0xc8] sm:$0xff] %v640_v33  ;;  %v648_v37 = vld [vmem:[%s1352_s0 + $0x248] sm:$0xff] }
  0x33   :  { %643 = vst [vmem:[%s1353_s1 + $0x138] sm:$0xff] %v642_v34  ;;  %v646_v36 = vld [vmem:[%s1352_s0 + $0x1d8] sm:$0xff]  ;;  %645 = vst [vmem:[%s1353_s1 + $0x1a8] sm:$0xff] %v644_v35  ;;  %v652_v39 = vld [vmem:[%s1352_s0 + $0x328] sm:$0xff] }
  0x34   :  { %647 = vst [vmem:[%s1353_s1 + $0x218] sm:$0xff] %v646_v36  ;;  %649 = vst [vmem:[%s1353_s1 + $0x288] sm:$0xff] %v648_v37  ;;  %v650_v38 = vld [vmem:[%s1352_s0 + $0x2b8] sm:$0xff]  ;;  %v654_v40 = vld [vmem:[%s1352_s0 + $0x8] sm:$0xff] }
  0x35   :  { %651 = vst [vmem:[%s1353_s1 + $0x2f8] sm:$0xff] %v650_v38  ;;  %653 = vst [vmem:[%s1353_s1 + $0x368] sm:$0xff] %v652_v39  ;;  %v656_v41 = vld [vmem:[%s1352_s0 + $0x78] sm:$0xff]  ;;  %v658_v42 = vld [vmem:[%s1352_s0 + $0xe8] sm:$0xff] }
  0x36   :  { %655 = vst [vmem:[%s1353_s1 + $0x68] sm:$0xff] %v654_v40  ;;  %v660_v43 = vld [vmem:[%s1352_s0 + $0x158] sm:$0xff]  ;;  %657 = vst [vmem:[%s1353_s1 + $0xd8] sm:$0xff] %v656_v41  ;;  %v662_v44 = vld [vmem:[%s1352_s0 + $0x1c8] sm:$0xff] }
  0x37   :  { %659 = vst [vmem:[%s1353_s1 + $0x148] sm:$0xff] %v658_v42  ;;  %661 = vst [vmem:[%s1353_s1 + $0x1b8] sm:$0xff] %v660_v43  ;;  %v664_v45 = vld [vmem:[%s1352_s0 + $0x238] sm:$0xff]  ;;  %v666_v46 = vld [vmem:[%s1352_s0 + $0x2a8] sm:$0xff] }
  0x38   :  { %663 = vst [vmem:[%s1353_s1 + $0x228] sm:$0xff] %v662_v44  ;;  %665 = vst [vmem:[%s1353_s1 + $0x298] sm:$0xff] %v664_v45  ;;  %v668_v47 = vld [vmem:[%s1352_s0 + $0x318] sm:$0xff] }
  0x39   :  { %667 = vst [vmem:[%s1353_s1 + $0x308] sm:$0xff] %v666_v46  ;;  %669 = vst [vmem:[%s1353_s1 + $0x378] sm:$0xff] %v668_v47 }

</bundles_post_ra>
